<compile_context>
chip_gen: v7x
topology: tpu7x:2x2x1
jax: 0.10.0
libtpu: 0.0.40
codegen_flags: <defaults>
</compile_context>

<pallas_src>
import jax
import jax.numpy as jnp
from jax import lax
from jax.experimental import pallas as pl
from jax.experimental.pallas import tpu as pltpu

# ----- model config (matches BiLSTM_CRF.__init__) -----
VOCAB = 50
EMB = 16                 # embedding_dim
HID = 32                 # hidden_dim (bidirectional -> HID//2 per direction)
H2 = HID // 2            # 16 hidden units per direction
G = 4 * HID              # 128 fused gate lanes
T = 8                    # sentence length
TAGS = {'B': 0, 'I': 1, 'E': 2, 'S': 3, '<START>': 4, '<STOP>': 5}
NTAG = len(TAGS)
TP = 8                   # tagset padded to 8 lanes
START_IDX = TAGS['<START>']
STOP_IDX = TAGS['<STOP>']
NEG = -1e9               # padding value so padded tags never win a max

# ----- single parameter-slab row layout (shape (128, 128) f32) -----
ROW_WX = 0               # rows  0..31 : fused input-projection weights  (32, 128)
ROW_WH = 32              # rows 32..63 : block-diagonal recurrent weights (32, 128)
ROW_BIAS = 64            # row  64     : fused gate bias (b_ih + b_hh, both directions)
ROW_WTAG = 72            # rows 72..103: hidden2tag weight (32, TP) in lanes 0..7
ROW_TRANS = 104          # rows 104..111: transT[prev, next] (TP, TP) in lanes 0..7
ROW_BTAG = 112           # row 112     : hidden2tag bias (TP,) in lanes 0..7
ROW_TSTOP = 113          # row 113     : transitions[STOP, :] padded
ROW_FV0 = 114            # row 114     : Viterbi init forward_var
SLAB_ROWS = 128


def bilstm_crf_kernel(x_ref, w_ref, path_ref, aux_ref):
    # ---- load parameter slab slices (static rectangular slices of one VMEM ref) ----
    Wx = w_ref[ROW_WX:ROW_WX + 2 * EMB, :]            # (32, 128)
    Wh = w_ref[ROW_WH:ROW_WH + HID, :]                # (32, 128)
    bias = w_ref[ROW_BIAS:ROW_BIAS + 1, :]            # (1, 128)
    wtagT = w_ref[ROW_WTAG:ROW_WTAG + HID, :][:, 0:TP]     # (32, TP)
    transT = w_ref[ROW_TRANS:ROW_TRANS + TP, :][:, 0:TP]   # (TP, TP) transT[prev, next]
    btag = w_ref[ROW_BTAG:ROW_BTAG + 1, :][:, 0:TP]        # (1, TP)
    tstop = w_ref[ROW_TSTOP:ROW_TSTOP + 1, :][:, 0:TP]     # (1, TP)
    fv = w_ref[ROW_FV0:ROW_FV0 + 1, :][:, 0:TP]            # (1, TP) initial forward_var

    # ---- fused bidirectional LSTM ----
    # X row s = [emb[s] (16), emb[T-1-s] (16)]; hoisted input projection for all steps.
    X = x_ref[...]                                                     # (T, 32)
    GX = jnp.dot(X, Wx, preferred_element_type=jnp.float32) + bias     # (T, 128)

    h = jnp.zeros((1, HID), jnp.float32)      # [h_f (16) | h_b (16)]
    c = jnp.zeros((1, HID), jnp.float32)
    hf = [None] * T
    hb = [None] * T
    for s in range(T):
        g = GX[s:s + 1, :] + jnp.dot(h, Wh, preferred_element_type=jnp.float32)  # (1, 128)
        sg = jax.nn.sigmoid(g)                 # one EUP pass over the full gate row
        tg = jnp.tanh(g)                       # one EUP pass over the full gate row
        i_g = sg[:, 0:HID]
        f_g = sg[:, HID:2 * HID]
        g_g = tg[:, 2 * HID:3 * HID]
        o_g = sg[:, 3 * HID:4 * HID]
        c = f_g * c + i_g * g_g
        h = o_g * jnp.tanh(c)
        hf[s] = h[:, 0:H2]                     # forward output at time s
        hb[T - 1 - s] = h[:, H2:HID]           # backward output at time T-1-s
    hf_stack = jnp.concatenate(hf, axis=0)     # (T, H2)
    hb_stack = jnp.concatenate(hb, axis=0)     # (T, H2) already in time order
    lstm_out = jnp.concatenate([hf_stack, hb_stack], axis=1)           # (T, HID)

    # ---- hidden2tag emission features ----
    feats = jnp.dot(lstm_out, wtagT, preferred_element_type=jnp.float32) + btag  # (T, TP)

    # ---- Viterbi forward recursion (backpointers kept as register values) ----
    eqm = (lax.broadcasted_iota(jnp.int32, (TP, TP), 0)
           == lax.broadcasted_iota(jnp.int32, (TP, TP), 1))
    ones_m = jnp.ones((TP, TP), jnp.float32)
    prev_idx = lax.broadcasted_iota(jnp.int32, (TP, TP), 0).astype(jnp.float32)

    bps = [None] * T
    for t in range(T):
        # lane->sublane broadcast of fv via diag(fv) @ ones (MXU trick)
        diag_fv = jnp.where(eqm, fv, 0.0)                                  # (TP, TP)
        FV = jnp.dot(diag_fv, ones_m, preferred_element_type=jnp.float32)  # FV[prev, n] = fv[prev]
        scores = FV + transT                                               # scores[prev, next]
        m = jnp.max(scores, axis=0, keepdims=True)                         # (1, TP)
        bps[t] = jnp.min(jnp.where(scores == m, prev_idx, 1e9),
                         axis=0, keepdims=True)                            # argmax prev (first max)
        fv = m + feats[t:t + 1, :]

    terminal = fv + tstop                                                  # (1, TP)
    score = jnp.max(terminal, axis=1, keepdims=True)                       # (1, 1)

    lane_i = lax.broadcasted_iota(jnp.int32, (1, TP), 1)
    lane_f = lane_i.astype(jnp.float32)
    best = jnp.min(jnp.where(terminal == score, lane_f, 1e9),
                   axis=1, keepdims=True)                                  # (1, 1) argmax tag

    # ---- in-kernel backtracking (vectorized one-hot selects, no scalar extraction) ----
    cur = best
    path = jnp.zeros((1, TP), jnp.float32)
    path = jnp.where(lane_i == (T - 1), cur, path)
    for t in range(T - 1, 0, -1):
        val = jnp.sum(jnp.where(lane_f == cur, bps[t], 0.0),
                      axis=1, keepdims=True)                               # (1,1) = bp[t][cur]
        path = jnp.where(lane_i == (t - 1), val, path)
        cur = val
    start = jnp.sum(jnp.where(lane_f == cur, bps[0], 0.0),
                    axis=1, keepdims=True)                                 # should equal START_IDX

    path_ref[...] = path.astype(jnp.int32)                                 # (1, TP) int32
    aux_ref[...] = jnp.where(lane_i == 0, score,
                             jnp.where(lane_i == 1, start, 0.0))           # lane0=score, lane1=start


def init_params(key):
    ks = jax.random.split(key, 12)
    std = 1.0 / jnp.sqrt(jnp.float32(H2))

    def u(k, shape):
        return jax.random.uniform(k, shape, jnp.float32, -std, std)

    p = dict(
        embed=jax.random.normal(ks[0], (VOCAB + 100, EMB), jnp.float32),
        w_ih_f=u(ks[1], (4 * H2, EMB)), w_hh_f=u(ks[2], (4 * H2, H2)),
        b_ih_f=u(ks[3], (4 * H2,)), b_hh_f=u(ks[4], (4 * H2,)),
        w_ih_b=u(ks[5], (4 * H2, EMB)), w_hh_b=u(ks[6], (4 * H2, H2)),
        b_ih_b=u(ks[7], (4 * H2,)), b_hh_b=u(ks[8], (4 * H2,)),
        w_tag=u(ks[9], (NTAG, HID)), b_tag=u(ks[10], (NTAG,)),
    )
    trans = jax.random.normal(ks[11], (NTAG, NTAG), jnp.float32)
    trans = trans.at[START_IDX, :].set(-10000.0)
    trans = trans.at[:, STOP_IDX].set(-10000.0)
    p['transitions'] = trans
    return p


def pack_params(p):
    """Pack all weights into one lane-dense (128, 128) f32 slab (built once per model)."""
    def gate_blocks(wT):       # (in, 4*H2) -> four (in, H2) blocks in gate order i,f,g,o
        return [wT[:, k * H2:(k + 1) * H2] for k in range(4)]

    Wx = jnp.zeros((2 * EMB, G), jnp.float32)
    Wh = jnp.zeros((HID, G), jnp.float32)
    bias = jnp.zeros((1, G), jnp.float32)
    gxf = gate_blocks(p['w_ih_f'].T)
    gxb = gate_blocks(p['w_ih_b'].T)
    ghf = gate_blocks(p['w_hh_f'].T)
    ghb = gate_blocks(p['w_hh_b'].T)
    bf = p['b_ih_f'] + p['b_hh_f']
    bb = p['b_ih_b'] + p['b_hh_b']
    for k in range(4):
        c0 = k * 2 * H2
        Wx = Wx.at[0:EMB, c0:c0 + H2].set(gxf[k])
        Wx = Wx.at[EMB:2 * EMB, c0 + H2:c0 + 2 * H2].set(gxb[k])
        Wh = Wh.at[0:H2, c0:c0 + H2].set(ghf[k])
        Wh = Wh.at[H2:HID, c0 + H2:c0 + 2 * H2].set(ghb[k])
        bias = bias.at[0, c0:c0 + H2].set(bf[k * H2:(k + 1) * H2])
        bias = bias.at[0, c0 + H2:c0 + 2 * H2].set(bb[k * H2:(k + 1) * H2])

    slab = jnp.zeros((SLAB_ROWS, G), jnp.float32)
    slab = slab.at[ROW_WX:ROW_WX + 2 * EMB, :].set(Wx)
    slab = slab.at[ROW_WH:ROW_WH + HID, :].set(Wh)
    slab = slab.at[ROW_BIAS, :].set(bias[0])

    wtagT = jnp.zeros((HID, TP), jnp.float32).at[:, :NTAG].set(p['w_tag'].T)
    slab = slab.at[ROW_WTAG:ROW_WTAG + HID, 0:TP].set(wtagT)
    slab = slab.at[ROW_BTAG, 0:TP].set(
        jnp.zeros((TP,), jnp.float32).at[:NTAG].set(p['b_tag']))

    transT = jnp.full((TP, TP), NEG, jnp.float32).at[:NTAG, :NTAG].set(p['transitions'].T)
    slab = slab.at[ROW_TRANS:ROW_TRANS + TP, 0:TP].set(transT)
    slab = slab.at[ROW_TSTOP, 0:TP].set(
        jnp.full((TP,), NEG, jnp.float32).at[:NTAG].set(p['transitions'][STOP_IDX, :]))
    fv0 = jnp.full((TP,), NEG, jnp.float32).at[:NTAG].set(-10000.0).at[START_IDX].set(0.0)
    slab = slab.at[ROW_FV0, 0:TP].set(fv0)
    return slab


def _pallas_forward(X, slab):
    vmem = pl.BlockSpec(memory_space=pltpu.MemorySpace.VMEM)
    return pl.pallas_call(
        bilstm_crf_kernel,
        out_shape=(jax.ShapeDtypeStruct((1, TP), jnp.int32),
                   jax.ShapeDtypeStruct((1, TP), jnp.float32)),
        in_specs=[vmem, vmem],
        out_specs=(vmem, vmem),
    )(X, slab)


@jax.jit
def forward_device(sentence, embed, slab):
    # Embedding lookup (gather) is glue in plain JAX; the time-reversed copy for the
    # backward direction is concatenated on lanes so the kernel needs no in-kernel flip.
    emb = embed[sentence].astype(jnp.float32)              # (T, EMB)
    X = jnp.concatenate([emb, emb[::-1]], axis=1)          # (T, 2*EMB)
    return _pallas_forward(X, slab)


def decode_host(path_dev, aux_dev):
    path_np, aux_np = jax.device_get((path_dev, aux_dev))
    start = int(round(float(aux_np[0, 1])))
    assert start == START_IDX
    score = float(aux_np[0, 0])
    return score, [int(v) for v in path_np[0]]


def bilstm_crf_forward(sentence, embed, slab):
    path_dev, aux_dev = forward_device(sentence, embed, slab)
    return decode_host(path_dev, aux_dev)


if __name__ == "__main__":
    key = jax.random.PRNGKey(0)
    k_param, k_sent = jax.random.split(key)
    params = init_params(k_param)
    slab = pack_params(params)
    sentence = jax.random.randint(k_sent, (T,), 0, VOCAB)

    # single jitted dispatch (embedding gather + Pallas kernel), single host sync
    path_dev, aux_dev = forward_device(sentence, params['embed'], slab)
    jax.block_until_ready((path_dev, aux_dev))

    score, tag_seq = decode_host(path_dev, aux_dev)
    assert len(tag_seq) == T
    assert all(0 <= t < NTAG for t in tag_seq)
    print("KERNEL_OK")
</pallas_src>

<mosaic_0001>
module attributes {stable_mosaic.version = 11 : i64} {
  func.func @bilstm_crf_kernel(%arg0: memref<8x32xf32, #tpu.memory_space<vmem>>, %arg1: memref<128x128xf32, #tpu.memory_space<vmem>>, %arg2: memref<1x8xi32, #tpu.memory_space<vmem>>, %arg3: memref<1x8xf32, #tpu.memory_space<vmem>>) attributes {dimension_semantics = [], scalar_prefetch = 0 : i64, scratch_operands = 0 : i64, tpu.core_type = #tpu.core_type<tc>} {
    %c0 = arith.constant 0 : index
    %c0_0 = arith.constant 0 : index
    %0 = vector.load %arg1[%c0, %c0_0] : memref<128x128xf32, #tpu.memory_space<vmem>>, vector<32x128xf32>
    %c32 = arith.constant 32 : index
    %c0_1 = arith.constant 0 : index
    %1 = vector.load %arg1[%c32, %c0_1] : memref<128x128xf32, #tpu.memory_space<vmem>>, vector<32x128xf32>
    %c64 = arith.constant 64 : index
    %c0_2 = arith.constant 0 : index
    %2 = vector.load %arg1[%c64, %c0_2] : memref<128x128xf32, #tpu.memory_space<vmem>>, vector<1x128xf32>
    %c72 = arith.constant 72 : index
    %c0_3 = arith.constant 0 : index
    %3 = vector.load %arg1[%c72, %c0_3] : memref<128x128xf32, #tpu.memory_space<vmem>>, vector<32x128xf32>
    %4 = vector.extract_strided_slice %3 {offsets = [0, 0], sizes = [32, 8], strides = [1, 1]} : vector<32x128xf32> to vector<32x8xf32>
    %c104 = arith.constant 104 : index
    %c0_4 = arith.constant 0 : index
    %5 = vector.load %arg1[%c104, %c0_4] : memref<128x128xf32, #tpu.memory_space<vmem>>, vector<8x128xf32>
    %6 = vector.extract_strided_slice %5 {offsets = [0, 0], sizes = [8, 8], strides = [1, 1]} : vector<8x128xf32> to vector<8x8xf32>
    %c112 = arith.constant 112 : index
    %c0_5 = arith.constant 0 : index
    %7 = vector.load %arg1[%c112, %c0_5] : memref<128x128xf32, #tpu.memory_space<vmem>>, vector<1x128xf32>
    %8 = vector.extract_strided_slice %7 {offsets = [0, 0], sizes = [1, 8], strides = [1, 1]} : vector<1x128xf32> to vector<1x8xf32>
    %c113 = arith.constant 113 : index
    %c0_6 = arith.constant 0 : index
    %9 = vector.load %arg1[%c113, %c0_6] : memref<128x128xf32, #tpu.memory_space<vmem>>, vector<1x128xf32>
    %10 = vector.extract_strided_slice %9 {offsets = [0, 0], sizes = [1, 8], strides = [1, 1]} : vector<1x128xf32> to vector<1x8xf32>
    %c114 = arith.constant 114 : index
    %c0_7 = arith.constant 0 : index
    %11 = vector.load %arg1[%c114, %c0_7] : memref<128x128xf32, #tpu.memory_space<vmem>>, vector<1x128xf32>
    %12 = vector.extract_strided_slice %11 {offsets = [0, 0], sizes = [1, 8], strides = [1, 1]} : vector<1x128xf32> to vector<1x8xf32>
    %c0_8 = arith.constant 0 : index
    %c0_9 = arith.constant 0 : index
    %13 = vector.load %arg0[%c0_8, %c0_9] : memref<8x32xf32, #tpu.memory_space<vmem>>, vector<8x32xf32>
    %cst = arith.constant dense<0.000000e+00> : vector<8x128xf32>
    %14 = tpu.matmul %13, %0, %cst {dimension_numbers = #tpu.dot_dimension_numbers<[1], [0], [0], [1], [0, 0, 1, 1], [], []>} : vector<8x32xf32>, vector<32x128xf32>, vector<8x128xf32> -> vector<8x128xf32>
    %15 = vector.broadcast %2 : vector<1x128xf32> to vector<8x128xf32>
    %16 = arith.addf %14, %15 : vector<8x128xf32>
    %cst_10 = arith.constant 0.000000e+00 : f32
    %17 = vector.broadcast %cst_10 : f32 to vector<1x32xf32>
    %cst_11 = arith.constant 0.000000e+00 : f32
    %18 = vector.broadcast %cst_11 : f32 to vector<1x32xf32>
    %19 = vector.extract_strided_slice %16 {offsets = [0, 0], sizes = [1, 128], strides = [1, 1]} : vector<8x128xf32> to vector<1x128xf32>
    %cst_12 = arith.constant dense<0.000000e+00> : vector<1x128xf32>
    %20 = tpu.matmul %17, %1, %cst_12 {dimension_numbers = #tpu.dot_dimension_numbers<[1], [0], [0], [1], [0, 0, 1, 1], [], []>} : vector<1x32xf32>, vector<32x128xf32>, vector<1x128xf32> -> vector<1x128xf32>
    %21 = arith.addf %19, %20 : vector<1x128xf32>
    %22 = arith.negf %21 : vector<1x128xf32>
    %23 = math.exp %22 : vector<1x128xf32>
    %cst_13 = arith.constant 1.000000e+00 : f32
    %24 = vector.broadcast %cst_13 : f32 to vector<1x128xf32>
    %25 = arith.addf %24, %23 : vector<1x128xf32>
    %26 = arith.divf %24, %25 : vector<1x128xf32>
    %27 = math.tanh %21 : vector<1x128xf32>
    %28 = vector.extract_strided_slice %26 {offsets = [0, 0], sizes = [1, 32], strides = [1, 1]} : vector<1x128xf32> to vector<1x32xf32>
    %29 = vector.extract_strided_slice %26 {offsets = [0, 32], sizes = [1, 32], strides = [1, 1]} : vector<1x128xf32> to vector<1x32xf32>
    %30 = vector.extract_strided_slice %27 {offsets = [0, 64], sizes = [1, 32], strides = [1, 1]} : vector<1x128xf32> to vector<1x32xf32>
    %31 = vector.extract_strided_slice %26 {offsets = [0, 96], sizes = [1, 32], strides = [1, 1]} : vector<1x128xf32> to vector<1x32xf32>
    %32 = arith.mulf %29, %18 : vector<1x32xf32>
    %33 = arith.mulf %28, %30 : vector<1x32xf32>
    %34 = arith.addf %32, %33 : vector<1x32xf32>
    %35 = math.tanh %34 : vector<1x32xf32>
    %36 = arith.mulf %31, %35 : vector<1x32xf32>
    %37 = vector.extract_strided_slice %36 {offsets = [0, 0], sizes = [1, 16], strides = [1, 1]} : vector<1x32xf32> to vector<1x16xf32>
    %38 = vector.extract_strided_slice %36 {offsets = [0, 16], sizes = [1, 16], strides = [1, 1]} : vector<1x32xf32> to vector<1x16xf32>
    %39 = vector.extract_strided_slice %16 {offsets = [1, 0], sizes = [1, 128], strides = [1, 1]} : vector<8x128xf32> to vector<1x128xf32>
    %cst_14 = arith.constant dense<0.000000e+00> : vector<1x128xf32>
    %40 = tpu.matmul %36, %1, %cst_14 {dimension_numbers = #tpu.dot_dimension_numbers<[1], [0], [0], [1], [0, 0, 1, 1], [], []>} : vector<1x32xf32>, vector<32x128xf32>, vector<1x128xf32> -> vector<1x128xf32>
    %41 = arith.addf %39, %40 : vector<1x128xf32>
    %42 = arith.negf %41 : vector<1x128xf32>
    %43 = math.exp %42 : vector<1x128xf32>
    %cst_15 = arith.constant 1.000000e+00 : f32
    %44 = vector.broadcast %cst_15 : f32 to vector<1x128xf32>
    %45 = arith.addf %44, %43 : vector<1x128xf32>
    %46 = arith.divf %44, %45 : vector<1x128xf32>
    %47 = math.tanh %41 : vector<1x128xf32>
    %48 = vector.extract_strided_slice %46 {offsets = [0, 0], sizes = [1, 32], strides = [1, 1]} : vector<1x128xf32> to vector<1x32xf32>
    %49 = vector.extract_strided_slice %46 {offsets = [0, 32], sizes = [1, 32], strides = [1, 1]} : vector<1x128xf32> to vector<1x32xf32>
    %50 = vector.extract_strided_slice %47 {offsets = [0, 64], sizes = [1, 32], strides = [1, 1]} : vector<1x128xf32> to vector<1x32xf32>
    %51 = vector.extract_strided_slice %46 {offsets = [0, 96], sizes = [1, 32], strides = [1, 1]} : vector<1x128xf32> to vector<1x32xf32>
    %52 = arith.mulf %49, %34 : vector<1x32xf32>
    %53 = arith.mulf %48, %50 : vector<1x32xf32>
    %54 = arith.addf %52, %53 : vector<1x32xf32>
    %55 = math.tanh %54 : vector<1x32xf32>
    %56 = arith.mulf %51, %55 : vector<1x32xf32>
    %57 = vector.extract_strided_slice %56 {offsets = [0, 0], sizes = [1, 16], strides = [1, 1]} : vector<1x32xf32> to vector<1x16xf32>
    %58 = vector.extract_strided_slice %56 {offsets = [0, 16], sizes = [1, 16], strides = [1, 1]} : vector<1x32xf32> to vector<1x16xf32>
    %59 = vector.extract_strided_slice %16 {offsets = [2, 0], sizes = [1, 128], strides = [1, 1]} : vector<8x128xf32> to vector<1x128xf32>
    %cst_16 = arith.constant dense<0.000000e+00> : vector<1x128xf32>
    %60 = tpu.matmul %56, %1, %cst_16 {dimension_numbers = #tpu.dot_dimension_numbers<[1], [0], [0], [1], [0, 0, 1, 1], [], []>} : vector<1x32xf32>, vector<32x128xf32>, vector<1x128xf32> -> vector<1x128xf32>
    %61 = arith.addf %59, %60 : vector<1x128xf32>
    %62 = arith.negf %61 : vector<1x128xf32>
    %63 = math.exp %62 : vector<1x128xf32>
    %cst_17 = arith.constant 1.000000e+00 : f32
    %64 = vector.broadcast %cst_17 : f32 to vector<1x128xf32>
    %65 = arith.addf %64, %63 : vector<1x128xf32>
    %66 = arith.divf %64, %65 : vector<1x128xf32>
    %67 = math.tanh %61 : vector<1x128xf32>
    %68 = vector.extract_strided_slice %66 {offsets = [0, 0], sizes = [1, 32], strides = [1, 1]} : vector<1x128xf32> to vector<1x32xf32>
    %69 = vector.extract_strided_slice %66 {offsets = [0, 32], sizes = [1, 32], strides = [1, 1]} : vector<1x128xf32> to vector<1x32xf32>
    %70 = vector.extract_strided_slice %67 {offsets = [0, 64], sizes = [1, 32], strides = [1, 1]} : vector<1x128xf32> to vector<1x32xf32>
    %71 = vector.extract_strided_slice %66 {offsets = [0, 96], sizes = [1, 32], strides = [1, 1]} : vector<1x128xf32> to vector<1x32xf32>
    %72 = arith.mulf %69, %54 : vector<1x32xf32>
    %73 = arith.mulf %68, %70 : vector<1x32xf32>
    %74 = arith.addf %72, %73 : vector<1x32xf32>
    %75 = math.tanh %74 : vector<1x32xf32>
    %76 = arith.mulf %71, %75 : vector<1x32xf32>
    %77 = vector.extract_strided_slice %76 {offsets = [0, 0], sizes = [1, 16], strides = [1, 1]} : vector<1x32xf32> to vector<1x16xf32>
    %78 = vector.extract_strided_slice %76 {offsets = [0, 16], sizes = [1, 16], strides = [1, 1]} : vector<1x32xf32> to vector<1x16xf32>
    %79 = vector.extract_strided_slice %16 {offsets = [3, 0], sizes = [1, 128], strides = [1, 1]} : vector<8x128xf32> to vector<1x128xf32>
    %cst_18 = arith.constant dense<0.000000e+00> : vector<1x128xf32>
    %80 = tpu.matmul %76, %1, %cst_18 {dimension_numbers = #tpu.dot_dimension_numbers<[1], [0], [0], [1], [0, 0, 1, 1], [], []>} : vector<1x32xf32>, vector<32x128xf32>, vector<1x128xf32> -> vector<1x128xf32>
    %81 = arith.addf %79, %80 : vector<1x128xf32>
    %82 = arith.negf %81 : vector<1x128xf32>
    %83 = math.exp %82 : vector<1x128xf32>
    %cst_19 = arith.constant 1.000000e+00 : f32
    %84 = vector.broadcast %cst_19 : f32 to vector<1x128xf32>
    %85 = arith.addf %84, %83 : vector<1x128xf32>
    %86 = arith.divf %84, %85 : vector<1x128xf32>
    %87 = math.tanh %81 : vector<1x128xf32>
    %88 = vector.extract_strided_slice %86 {offsets = [0, 0], sizes = [1, 32], strides = [1, 1]} : vector<1x128xf32> to vector<1x32xf32>
    %89 = vector.extract_strided_slice %86 {offsets = [0, 32], sizes = [1, 32], strides = [1, 1]} : vector<1x128xf32> to vector<1x32xf32>
    %90 = vector.extract_strided_slice %87 {offsets = [0, 64], sizes = [1, 32], strides = [1, 1]} : vector<1x128xf32> to vector<1x32xf32>
    %91 = vector.extract_strided_slice %86 {offsets = [0, 96], sizes = [1, 32], strides = [1, 1]} : vector<1x128xf32> to vector<1x32xf32>
    %92 = arith.mulf %89, %74 : vector<1x32xf32>
    %93 = arith.mulf %88, %90 : vector<1x32xf32>
    %94 = arith.addf %92, %93 : vector<1x32xf32>
    %95 = math.tanh %94 : vector<1x32xf32>
    %96 = arith.mulf %91, %95 : vector<1x32xf32>
    %97 = vector.extract_strided_slice %96 {offsets = [0, 0], sizes = [1, 16], strides = [1, 1]} : vector<1x32xf32> to vector<1x16xf32>
    %98 = vector.extract_strided_slice %96 {offsets = [0, 16], sizes = [1, 16], strides = [1, 1]} : vector<1x32xf32> to vector<1x16xf32>
    %99 = vector.extract_strided_slice %16 {offsets = [4, 0], sizes = [1, 128], strides = [1, 1]} : vector<8x128xf32> to vector<1x128xf32>
    %cst_20 = arith.constant dense<0.000000e+00> : vector<1x128xf32>
    %100 = tpu.matmul %96, %1, %cst_20 {dimension_numbers = #tpu.dot_dimension_numbers<[1], [0], [0], [1], [0, 0, 1, 1], [], []>} : vector<1x32xf32>, vector<32x128xf32>, vector<1x128xf32> -> vector<1x128xf32>
    %101 = arith.addf %99, %100 : vector<1x128xf32>
    %102 = arith.negf %101 : vector<1x128xf32>
    %103 = math.exp %102 : vector<1x128xf32>
    %cst_21 = arith.constant 1.000000e+00 : f32
    %104 = vector.broadcast %cst_21 : f32 to vector<1x128xf32>
    %105 = arith.addf %104, %103 : vector<1x128xf32>
    %106 = arith.divf %104, %105 : vector<1x128xf32>
    %107 = math.tanh %101 : vector<1x128xf32>
    %108 = vector.extract_strided_slice %106 {offsets = [0, 0], sizes = [1, 32], strides = [1, 1]} : vector<1x128xf32> to vector<1x32xf32>
    %109 = vector.extract_strided_slice %106 {offsets = [0, 32], sizes = [1, 32], strides = [1, 1]} : vector<1x128xf32> to vector<1x32xf32>
    %110 = vector.extract_strided_slice %107 {offsets = [0, 64], sizes = [1, 32], strides = [1, 1]} : vector<1x128xf32> to vector<1x32xf32>
    %111 = vector.extract_strided_slice %106 {offsets = [0, 96], sizes = [1, 32], strides = [1, 1]} : vector<1x128xf32> to vector<1x32xf32>
    %112 = arith.mulf %109, %94 : vector<1x32xf32>
    %113 = arith.mulf %108, %110 : vector<1x32xf32>
    %114 = arith.addf %112, %113 : vector<1x32xf32>
    %115 = math.tanh %114 : vector<1x32xf32>
    %116 = arith.mulf %111, %115 : vector<1x32xf32>
    %117 = vector.extract_strided_slice %116 {offsets = [0, 0], sizes = [1, 16], strides = [1, 1]} : vector<1x32xf32> to vector<1x16xf32>
    %118 = vector.extract_strided_slice %116 {offsets = [0, 16], sizes = [1, 16], strides = [1, 1]} : vector<1x32xf32> to vector<1x16xf32>
    %119 = vector.extract_strided_slice %16 {offsets = [5, 0], sizes = [1, 128], strides = [1, 1]} : vector<8x128xf32> to vector<1x128xf32>
    %cst_22 = arith.constant dense<0.000000e+00> : vector<1x128xf32>
    %120 = tpu.matmul %116, %1, %cst_22 {dimension_numbers = #tpu.dot_dimension_numbers<[1], [0], [0], [1], [0, 0, 1, 1], [], []>} : vector<1x32xf32>, vector<32x128xf32>, vector<1x128xf32> -> vector<1x128xf32>
    %121 = arith.addf %119, %120 : vector<1x128xf32>
    %122 = arith.negf %121 : vector<1x128xf32>
    %123 = math.exp %122 : vector<1x128xf32>
    %cst_23 = arith.constant 1.000000e+00 : f32
    %124 = vector.broadcast %cst_23 : f32 to vector<1x128xf32>
    %125 = arith.addf %124, %123 : vector<1x128xf32>
    %126 = arith.divf %124, %125 : vector<1x128xf32>
    %127 = math.tanh %121 : vector<1x128xf32>
    %128 = vector.extract_strided_slice %126 {offsets = [0, 0], sizes = [1, 32], strides = [1, 1]} : vector<1x128xf32> to vector<1x32xf32>
    %129 = vector.extract_strided_slice %126 {offsets = [0, 32], sizes = [1, 32], strides = [1, 1]} : vector<1x128xf32> to vector<1x32xf32>
    %130 = vector.extract_strided_slice %127 {offsets = [0, 64], sizes = [1, 32], strides = [1, 1]} : vector<1x128xf32> to vector<1x32xf32>
    %131 = vector.extract_strided_slice %126 {offsets = [0, 96], sizes = [1, 32], strides = [1, 1]} : vector<1x128xf32> to vector<1x32xf32>
    %132 = arith.mulf %129, %114 : vector<1x32xf32>
    %133 = arith.mulf %128, %130 : vector<1x32xf32>
    %134 = arith.addf %132, %133 : vector<1x32xf32>
    %135 = math.tanh %134 : vector<1x32xf32>
    %136 = arith.mulf %131, %135 : vector<1x32xf32>
    %137 = vector.extract_strided_slice %136 {offsets = [0, 0], sizes = [1, 16], strides = [1, 1]} : vector<1x32xf32> to vector<1x16xf32>
    %138 = vector.extract_strided_slice %136 {offsets = [0, 16], sizes = [1, 16], strides = [1, 1]} : vector<1x32xf32> to vector<1x16xf32>
    %139 = vector.extract_strided_slice %16 {offsets = [6, 0], sizes = [1, 128], strides = [1, 1]} : vector<8x128xf32> to vector<1x128xf32>
    %cst_24 = arith.constant dense<0.000000e+00> : vector<1x128xf32>
    %140 = tpu.matmul %136, %1, %cst_24 {dimension_numbers = #tpu.dot_dimension_numbers<[1], [0], [0], [1], [0, 0, 1, 1], [], []>} : vector<1x32xf32>, vector<32x128xf32>, vector<1x128xf32> -> vector<1x128xf32>
    %141 = arith.addf %139, %140 : vector<1x128xf32>
    %142 = arith.negf %141 : vector<1x128xf32>
    %143 = math.exp %142 : vector<1x128xf32>
    %cst_25 = arith.constant 1.000000e+00 : f32
    %144 = vector.broadcast %cst_25 : f32 to vector<1x128xf32>
    %145 = arith.addf %144, %143 : vector<1x128xf32>
    %146 = arith.divf %144, %145 : vector<1x128xf32>
    %147 = math.tanh %141 : vector<1x128xf32>
    %148 = vector.extract_strided_slice %146 {offsets = [0, 0], sizes = [1, 32], strides = [1, 1]} : vector<1x128xf32> to vector<1x32xf32>
    %149 = vector.extract_strided_slice %146 {offsets = [0, 32], sizes = [1, 32], strides = [1, 1]} : vector<1x128xf32> to vector<1x32xf32>
    %150 = vector.extract_strided_slice %147 {offsets = [0, 64], sizes = [1, 32], strides = [1, 1]} : vector<1x128xf32> to vector<1x32xf32>
    %151 = vector.extract_strided_slice %146 {offsets = [0, 96], sizes = [1, 32], strides = [1, 1]} : vector<1x128xf32> to vector<1x32xf32>
    %152 = arith.mulf %149, %134 : vector<1x32xf32>
    %153 = arith.mulf %148, %150 : vector<1x32xf32>
    %154 = arith.addf %152, %153 : vector<1x32xf32>
    %155 = math.tanh %154 : vector<1x32xf32>
    %156 = arith.mulf %151, %155 : vector<1x32xf32>
    %157 = vector.extract_strided_slice %156 {offsets = [0, 0], sizes = [1, 16], strides = [1, 1]} : vector<1x32xf32> to vector<1x16xf32>
    %158 = vector.extract_strided_slice %156 {offsets = [0, 16], sizes = [1, 16], strides = [1, 1]} : vector<1x32xf32> to vector<1x16xf32>
    %159 = vector.extract_strided_slice %16 {offsets = [7, 0], sizes = [1, 128], strides = [1, 1]} : vector<8x128xf32> to vector<1x128xf32>
    %cst_26 = arith.constant dense<0.000000e+00> : vector<1x128xf32>
    %160 = tpu.matmul %156, %1, %cst_26 {dimension_numbers = #tpu.dot_dimension_numbers<[1], [0], [0], [1], [0, 0, 1, 1], [], []>} : vector<1x32xf32>, vector<32x128xf32>, vector<1x128xf32> -> vector<1x128xf32>
    %161 = arith.addf %159, %160 : vector<1x128xf32>
    %162 = arith.negf %161 : vector<1x128xf32>
    %163 = math.exp %162 : vector<1x128xf32>
    %cst_27 = arith.constant 1.000000e+00 : f32
    %164 = vector.broadcast %cst_27 : f32 to vector<1x128xf32>
    %165 = arith.addf %164, %163 : vector<1x128xf32>
    %166 = arith.divf %164, %165 : vector<1x128xf32>
    %167 = math.tanh %161 : vector<1x128xf32>
    %168 = vector.extract_strided_slice %166 {offsets = [0, 0], sizes = [1, 32], strides = [1, 1]} : vector<1x128xf32> to vector<1x32xf32>
    %169 = vector.extract_strided_slice %166 {offsets = [0, 32], sizes = [1, 32], strides = [1, 1]} : vector<1x128xf32> to vector<1x32xf32>
    %170 = vector.extract_strided_slice %167 {offsets = [0, 64], sizes = [1, 32], strides = [1, 1]} : vector<1x128xf32> to vector<1x32xf32>
    %171 = vector.extract_strided_slice %166 {offsets = [0, 96], sizes = [1, 32], strides = [1, 1]} : vector<1x128xf32> to vector<1x32xf32>
    %172 = arith.mulf %169, %154 : vector<1x32xf32>
    %173 = arith.mulf %168, %170 : vector<1x32xf32>
    %174 = arith.addf %172, %173 : vector<1x32xf32>
    %175 = math.tanh %174 : vector<1x32xf32>
    %176 = arith.mulf %171, %175 : vector<1x32xf32>
    %177 = vector.extract_strided_slice %176 {offsets = [0, 0], sizes = [1, 16], strides = [1, 1]} : vector<1x32xf32> to vector<1x16xf32>
    %178 = vector.extract_strided_slice %176 {offsets = [0, 16], sizes = [1, 16], strides = [1, 1]} : vector<1x32xf32> to vector<1x16xf32>
    %179 = tpu.concatenate %37, %57, %77, %97, %117, %137, %157, %177 in 0 : vector<1x16xf32>, vector<1x16xf32>, vector<1x16xf32>, vector<1x16xf32>, vector<1x16xf32>, vector<1x16xf32>, vector<1x16xf32>, vector<1x16xf32> -> vector<8x16xf32>
    %180 = tpu.concatenate %178, %158, %138, %118, %98, %78, %58, %38 in 0 : vector<1x16xf32>, vector<1x16xf32>, vector<1x16xf32>, vector<1x16xf32>, vector<1x16xf32>, vector<1x16xf32>, vector<1x16xf32>, vector<1x16xf32> -> vector<8x16xf32>
    %181 = tpu.concatenate %179, %180 in 1 : vector<8x16xf32>, vector<8x16xf32> -> vector<8x32xf32>
    %cst_28 = arith.constant dense<0.000000e+00> : vector<8x8xf32>
    %182 = tpu.matmul %181, %4, %cst_28 {dimension_numbers = #tpu.dot_dimension_numbers<[1], [0], [0], [1], [0, 0, 1, 1], [], []>} : vector<8x32xf32>, vector<32x8xf32>, vector<8x8xf32> -> vector<8x8xf32>
    %183 = vector.broadcast %8 : vector<1x8xf32> to vector<8x8xf32>
    %184 = arith.addf %182, %183 : vector<8x8xf32>
    %185 = tpu.iota {dimensions = array<i32: 0>} : vector<8x8xi32>
    %186 = tpu.iota {dimensions = array<i32: 1>} : vector<8x8xi32>
    %187 = arith.cmpi eq, %185, %186 : vector<8x8xi32>
    %cst_29 = arith.constant 1.000000e+00 : f32
    %188 = vector.broadcast %cst_29 : f32 to vector<8x8xf32>
    %189 = tpu.iota {dimensions = array<i32: 0>} : vector<8x8xi32>
    %190 = arith.sitofp %189 : vector<8x8xi32> to vector<8x8xf32>
    %cst_30 = arith.constant 0.000000e+00 : f32
    %191 = vector.shape_cast %12 : vector<1x8xf32> to vector<1x8xf32>
    %192 = vector.broadcast %191 : vector<1x8xf32> to vector<8x8xf32>
    %193 = vector.broadcast %cst_30 : f32 to vector<8x8xf32>
    %194 = arith.select %187, %192, %193 : vector<8x8xi1>, vector<8x8xf32>
    %cst_31 = arith.constant dense<0.000000e+00> : vector<8x8xf32>
    %195 = tpu.matmul %194, %188, %cst_31 {dimension_numbers = #tpu.dot_dimension_numbers<[1], [0], [0], [1], [0, 0, 1, 1], [], []>} : vector<8x8xf32>, vector<8x8xf32>, vector<8x8xf32> -> vector<8x8xf32>
    %196 = arith.addf %195, %6 : vector<8x8xf32>
    %cst_32 = arith.constant dense<0xFF800000> : vector<8xf32>
    %197 = vector.multi_reduction <maximumf>, %196, %cst_32 [0] : vector<8x8xf32> to vector<8xf32>
    %198 = vector.shape_cast %197 : vector<8xf32> to vector<1x8xf32>
    %199 = vector.broadcast %198 : vector<1x8xf32> to vector<8x8xf32>
    %200 = arith.cmpf oeq, %196, %199 : vector<8x8xf32>
    %cst_33 = arith.constant 1.000000e+09 : f32
    %201 = vector.broadcast %cst_33 : f32 to vector<8x8xf32>
    %202 = arith.select %200, %190, %201 : vector<8x8xi1>, vector<8x8xf32>
    %cst_34 = arith.constant dense<0x7F800000> : vector<8xf32>
    %203 = vector.multi_reduction <minimumf>, %202, %cst_34 [0] : vector<8x8xf32> to vector<8xf32>
    %204 = vector.shape_cast %203 : vector<8xf32> to vector<1x8xf32>
    %205 = vector.extract_strided_slice %184 {offsets = [0, 0], sizes = [1, 8], strides = [1, 1]} : vector<8x8xf32> to vector<1x8xf32>
    %206 = arith.addf %198, %205 : vector<1x8xf32>
    %cst_35 = arith.constant 0.000000e+00 : f32
    %207 = vector.shape_cast %206 : vector<1x8xf32> to vector<1x8xf32>
    %208 = vector.broadcast %207 : vector<1x8xf32> to vector<8x8xf32>
    %209 = vector.broadcast %cst_35 : f32 to vector<8x8xf32>
    %210 = arith.select %187, %208, %209 : vector<8x8xi1>, vector<8x8xf32>
    %cst_36 = arith.constant dense<0.000000e+00> : vector<8x8xf32>
    %211 = tpu.matmul %210, %188, %cst_36 {dimension_numbers = #tpu.dot_dimension_numbers<[1], [0], [0], [1], [0, 0, 1, 1], [], []>} : vector<8x8xf32>, vector<8x8xf32>, vector<8x8xf32> -> vector<8x8xf32>
    %212 = arith.addf %211, %6 : vector<8x8xf32>
    %cst_37 = arith.constant dense<0xFF800000> : vector<8xf32>
    %213 = vector.multi_reduction <maximumf>, %212, %cst_37 [0] : vector<8x8xf32> to vector<8xf32>
    %214 = vector.shape_cast %213 : vector<8xf32> to vector<1x8xf32>
    %215 = vector.broadcast %214 : vector<1x8xf32> to vector<8x8xf32>
    %216 = arith.cmpf oeq, %212, %215 : vector<8x8xf32>
    %cst_38 = arith.constant 1.000000e+09 : f32
    %217 = vector.broadcast %cst_38 : f32 to vector<8x8xf32>
    %218 = arith.select %216, %190, %217 : vector<8x8xi1>, vector<8x8xf32>
    %cst_39 = arith.constant dense<0x7F800000> : vector<8xf32>
    %219 = vector.multi_reduction <minimumf>, %218, %cst_39 [0] : vector<8x8xf32> to vector<8xf32>
    %220 = vector.shape_cast %219 : vector<8xf32> to vector<1x8xf32>
    %221 = vector.extract_strided_slice %184 {offsets = [1, 0], sizes = [1, 8], strides = [1, 1]} : vector<8x8xf32> to vector<1x8xf32>
    %222 = arith.addf %214, %221 : vector<1x8xf32>
    %cst_40 = arith.constant 0.000000e+00 : f32
    %223 = vector.shape_cast %222 : vector<1x8xf32> to vector<1x8xf32>
    %224 = vector.broadcast %223 : vector<1x8xf32> to vector<8x8xf32>
    %225 = vector.broadcast %cst_40 : f32 to vector<8x8xf32>
    %226 = arith.select %187, %224, %225 : vector<8x8xi1>, vector<8x8xf32>
    %cst_41 = arith.constant dense<0.000000e+00> : vector<8x8xf32>
    %227 = tpu.matmul %226, %188, %cst_41 {dimension_numbers = #tpu.dot_dimension_numbers<[1], [0], [0], [1], [0, 0, 1, 1], [], []>} : vector<8x8xf32>, vector<8x8xf32>, vector<8x8xf32> -> vector<8x8xf32>
    %228 = arith.addf %227, %6 : vector<8x8xf32>
    %cst_42 = arith.constant dense<0xFF800000> : vector<8xf32>
    %229 = vector.multi_reduction <maximumf>, %228, %cst_42 [0] : vector<8x8xf32> to vector<8xf32>
    %230 = vector.shape_cast %229 : vector<8xf32> to vector<1x8xf32>
    %231 = vector.broadcast %230 : vector<1x8xf32> to vector<8x8xf32>
    %232 = arith.cmpf oeq, %228, %231 : vector<8x8xf32>
    %cst_43 = arith.constant 1.000000e+09 : f32
    %233 = vector.broadcast %cst_43 : f32 to vector<8x8xf32>
    %234 = arith.select %232, %190, %233 : vector<8x8xi1>, vector<8x8xf32>
    %cst_44 = arith.constant dense<0x7F800000> : vector<8xf32>
    %235 = vector.multi_reduction <minimumf>, %234, %cst_44 [0] : vector<8x8xf32> to vector<8xf32>
    %236 = vector.shape_cast %235 : vector<8xf32> to vector<1x8xf32>
    %237 = vector.extract_strided_slice %184 {offsets = [2, 0], sizes = [1, 8], strides = [1, 1]} : vector<8x8xf32> to vector<1x8xf32>
    %238 = arith.addf %230, %237 : vector<1x8xf32>
    %cst_45 = arith.constant 0.000000e+00 : f32
    %239 = vector.shape_cast %238 : vector<1x8xf32> to vector<1x8xf32>
    %240 = vector.broadcast %239 : vector<1x8xf32> to vector<8x8xf32>
    %241 = vector.broadcast %cst_45 : f32 to vector<8x8xf32>
    %242 = arith.select %187, %240, %241 : vector<8x8xi1>, vector<8x8xf32>
    %cst_46 = arith.constant dense<0.000000e+00> : vector<8x8xf32>
    %243 = tpu.matmul %242, %188, %cst_46 {dimension_numbers = #tpu.dot_dimension_numbers<[1], [0], [0], [1], [0, 0, 1, 1], [], []>} : vector<8x8xf32>, vector<8x8xf32>, vector<8x8xf32> -> vector<8x8xf32>
    %244 = arith.addf %243, %6 : vector<8x8xf32>
    %cst_47 = arith.constant dense<0xFF800000> : vector<8xf32>
    %245 = vector.multi_reduction <maximumf>, %244, %cst_47 [0] : vector<8x8xf32> to vector<8xf32>
    %246 = vector.shape_cast %245 : vector<8xf32> to vector<1x8xf32>
    %247 = vector.broadcast %246 : vector<1x8xf32> to vector<8x8xf32>
    %248 = arith.cmpf oeq, %244, %247 : vector<8x8xf32>
    %cst_48 = arith.constant 1.000000e+09 : f32
    %249 = vector.broadcast %cst_48 : f32 to vector<8x8xf32>
    %250 = arith.select %248, %190, %249 : vector<8x8xi1>, vector<8x8xf32>
    %cst_49 = arith.constant dense<0x7F800000> : vector<8xf32>
    %251 = vector.multi_reduction <minimumf>, %250, %cst_49 [0] : vector<8x8xf32> to vector<8xf32>
    %252 = vector.shape_cast %251 : vector<8xf32> to vector<1x8xf32>
    %253 = vector.extract_strided_slice %184 {offsets = [3, 0], sizes = [1, 8], strides = [1, 1]} : vector<8x8xf32> to vector<1x8xf32>
    %254 = arith.addf %246, %253 : vector<1x8xf32>
    %cst_50 = arith.constant 0.000000e+00 : f32
    %255 = vector.shape_cast %254 : vector<1x8xf32> to vector<1x8xf32>
    %256 = vector.broadcast %255 : vector<1x8xf32> to vector<8x8xf32>
    %257 = vector.broadcast %cst_50 : f32 to vector<8x8xf32>
    %258 = arith.select %187, %256, %257 : vector<8x8xi1>, vector<8x8xf32>
    %cst_51 = arith.constant dense<0.000000e+00> : vector<8x8xf32>
    %259 = tpu.matmul %258, %188, %cst_51 {dimension_numbers = #tpu.dot_dimension_numbers<[1], [0], [0], [1], [0, 0, 1, 1], [], []>} : vector<8x8xf32>, vector<8x8xf32>, vector<8x8xf32> -> vector<8x8xf32>
    %260 = arith.addf %259, %6 : vector<8x8xf32>
    %cst_52 = arith.constant dense<0xFF800000> : vector<8xf32>
    %261 = vector.multi_reduction <maximumf>, %260, %cst_52 [0] : vector<8x8xf32> to vector<8xf32>
    %262 = vector.shape_cast %261 : vector<8xf32> to vector<1x8xf32>
    %263 = vector.broadcast %262 : vector<1x8xf32> to vector<8x8xf32>
    %264 = arith.cmpf oeq, %260, %263 : vector<8x8xf32>
    %cst_53 = arith.constant 1.000000e+09 : f32
    %265 = vector.broadcast %cst_53 : f32 to vector<8x8xf32>
    %266 = arith.select %264, %190, %265 : vector<8x8xi1>, vector<8x8xf32>
    %cst_54 = arith.constant dense<0x7F800000> : vector<8xf32>
    %267 = vector.multi_reduction <minimumf>, %266, %cst_54 [0] : vector<8x8xf32> to vector<8xf32>
    %268 = vector.shape_cast %267 : vector<8xf32> to vector<1x8xf32>
    %269 = vector.extract_strided_slice %184 {offsets = [4, 0], sizes = [1, 8], strides = [1, 1]} : vector<8x8xf32> to vector<1x8xf32>
    %270 = arith.addf %262, %269 : vector<1x8xf32>
    %cst_55 = arith.constant 0.000000e+00 : f32
    %271 = vector.shape_cast %270 : vector<1x8xf32> to vector<1x8xf32>
    %272 = vector.broadcast %271 : vector<1x8xf32> to vector<8x8xf32>
    %273 = vector.broadcast %cst_55 : f32 to vector<8x8xf32>
    %274 = arith.select %187, %272, %273 : vector<8x8xi1>, vector<8x8xf32>
    %cst_56 = arith.constant dense<0.000000e+00> : vector<8x8xf32>
    %275 = tpu.matmul %274, %188, %cst_56 {dimension_numbers = #tpu.dot_dimension_numbers<[1], [0], [0], [1], [0, 0, 1, 1], [], []>} : vector<8x8xf32>, vector<8x8xf32>, vector<8x8xf32> -> vector<8x8xf32>
    %276 = arith.addf %275, %6 : vector<8x8xf32>
    %cst_57 = arith.constant dense<0xFF800000> : vector<8xf32>
    %277 = vector.multi_reduction <maximumf>, %276, %cst_57 [0] : vector<8x8xf32> to vector<8xf32>
    %278 = vector.shape_cast %277 : vector<8xf32> to vector<1x8xf32>
    %279 = vector.broadcast %278 : vector<1x8xf32> to vector<8x8xf32>
    %280 = arith.cmpf oeq, %276, %279 : vector<8x8xf32>
    %cst_58 = arith.constant 1.000000e+09 : f32
    %281 = vector.broadcast %cst_58 : f32 to vector<8x8xf32>
    %282 = arith.select %280, %190, %281 : vector<8x8xi1>, vector<8x8xf32>
    %cst_59 = arith.constant dense<0x7F800000> : vector<8xf32>
    %283 = vector.multi_reduction <minimumf>, %282, %cst_59 [0] : vector<8x8xf32> to vector<8xf32>
    %284 = vector.shape_cast %283 : vector<8xf32> to vector<1x8xf32>
    %285 = vector.extract_strided_slice %184 {offsets = [5, 0], sizes = [1, 8], strides = [1, 1]} : vector<8x8xf32> to vector<1x8xf32>
    %286 = arith.addf %278, %285 : vector<1x8xf32>
    %cst_60 = arith.constant 0.000000e+00 : f32
    %287 = vector.shape_cast %286 : vector<1x8xf32> to vector<1x8xf32>
    %288 = vector.broadcast %287 : vector<1x8xf32> to vector<8x8xf32>
    %289 = vector.broadcast %cst_60 : f32 to vector<8x8xf32>
    %290 = arith.select %187, %288, %289 : vector<8x8xi1>, vector<8x8xf32>
    %cst_61 = arith.constant dense<0.000000e+00> : vector<8x8xf32>
    %291 = tpu.matmul %290, %188, %cst_61 {dimension_numbers = #tpu.dot_dimension_numbers<[1], [0], [0], [1], [0, 0, 1, 1], [], []>} : vector<8x8xf32>, vector<8x8xf32>, vector<8x8xf32> -> vector<8x8xf32>
    %292 = arith.addf %291, %6 : vector<8x8xf32>
    %cst_62 = arith.constant dense<0xFF800000> : vector<8xf32>
    %293 = vector.multi_reduction <maximumf>, %292, %cst_62 [0] : vector<8x8xf32> to vector<8xf32>
    %294 = vector.shape_cast %293 : vector<8xf32> to vector<1x8xf32>
    %295 = vector.broadcast %294 : vector<1x8xf32> to vector<8x8xf32>
    %296 = arith.cmpf oeq, %292, %295 : vector<8x8xf32>
    %cst_63 = arith.constant 1.000000e+09 : f32
    %297 = vector.broadcast %cst_63 : f32 to vector<8x8xf32>
    %298 = arith.select %296, %190, %297 : vector<8x8xi1>, vector<8x8xf32>
    %cst_64 = arith.constant dense<0x7F800000> : vector<8xf32>
    %299 = vector.multi_reduction <minimumf>, %298, %cst_64 [0] : vector<8x8xf32> to vector<8xf32>
    %300 = vector.shape_cast %299 : vector<8xf32> to vector<1x8xf32>
    %301 = vector.extract_strided_slice %184 {offsets = [6, 0], sizes = [1, 8], strides = [1, 1]} : vector<8x8xf32> to vector<1x8xf32>
    %302 = arith.addf %294, %301 : vector<1x8xf32>
    %cst_65 = arith.constant 0.000000e+00 : f32
    %303 = vector.shape_cast %302 : vector<1x8xf32> to vector<1x8xf32>
    %304 = vector.broadcast %303 : vector<1x8xf32> to vector<8x8xf32>
    %305 = vector.broadcast %cst_65 : f32 to vector<8x8xf32>
    %306 = arith.select %187, %304, %305 : vector<8x8xi1>, vector<8x8xf32>
    %cst_66 = arith.constant dense<0.000000e+00> : vector<8x8xf32>
    %307 = tpu.matmul %306, %188, %cst_66 {dimension_numbers = #tpu.dot_dimension_numbers<[1], [0], [0], [1], [0, 0, 1, 1], [], []>} : vector<8x8xf32>, vector<8x8xf32>, vector<8x8xf32> -> vector<8x8xf32>
    %308 = arith.addf %307, %6 : vector<8x8xf32>
    %cst_67 = arith.constant dense<0xFF800000> : vector<8xf32>
    %309 = vector.multi_reduction <maximumf>, %308, %cst_67 [0] : vector<8x8xf32> to vector<8xf32>
    %310 = vector.shape_cast %309 : vector<8xf32> to vector<1x8xf32>
    %311 = vector.broadcast %310 : vector<1x8xf32> to vector<8x8xf32>
    %312 = arith.cmpf oeq, %308, %311 : vector<8x8xf32>
    %cst_68 = arith.constant 1.000000e+09 : f32
    %313 = vector.broadcast %cst_68 : f32 to vector<8x8xf32>
    %314 = arith.select %312, %190, %313 : vector<8x8xi1>, vector<8x8xf32>
    %cst_69 = arith.constant dense<0x7F800000> : vector<8xf32>
    %315 = vector.multi_reduction <minimumf>, %314, %cst_69 [0] : vector<8x8xf32> to vector<8xf32>
    %316 = vector.shape_cast %315 : vector<8xf32> to vector<1x8xf32>
    %317 = vector.extract_strided_slice %184 {offsets = [7, 0], sizes = [1, 8], strides = [1, 1]} : vector<8x8xf32> to vector<1x8xf32>
    %318 = arith.addf %310, %317 : vector<1x8xf32>
    %319 = arith.addf %318, %10 : vector<1x8xf32>
    %cst_70 = arith.constant dense<0xFF800000> : vector<1xf32>
    %320 = vector.multi_reduction <maximumf>, %319, %cst_70 [1] : vector<1x8xf32> to vector<1xf32>
    %321 = vector.shape_cast %320 : vector<1xf32> to vector<1x1xf32>
    %322 = tpu.iota {dimensions = array<i32: 1>} : vector<1x8xi32>
    %323 = arith.sitofp %322 : vector<1x8xi32> to vector<1x8xf32>
    %324 = vector.broadcast %321 : vector<1x1xf32> to vector<1x8xf32>
    %325 = arith.cmpf oeq, %319, %324 : vector<1x8xf32>
    %cst_71 = arith.constant 1.000000e+09 : f32
    %326 = vector.broadcast %cst_71 : f32 to vector<1x8xf32>
    %327 = arith.select %325, %323, %326 : vector<1x8xi1>, vector<1x8xf32>
    %cst_72 = arith.constant dense<0x7F800000> : vector<1xf32>
    %328 = vector.multi_reduction <minimumf>, %327, %cst_72 [1] : vector<1x8xf32> to vector<1xf32>
    %329 = vector.shape_cast %328 : vector<1xf32> to vector<1x1xf32>
    %cst_73 = arith.constant 0.000000e+00 : f32
    %330 = vector.broadcast %cst_73 : f32 to vector<1x8xf32>
    %c7_i32 = arith.constant 7 : i32
    %331 = vector.broadcast %c7_i32 : i32 to vector<1x8xi32>
    %332 = arith.cmpi eq, %322, %331 : vector<1x8xi32>
    %333 = vector.shape_cast %329 : vector<1x1xf32> to vector<1x1xf32>
    %334 = vector.broadcast %333 : vector<1x1xf32> to vector<1x8xf32>
    %335 = arith.select %332, %334, %330 : vector<1x8xi1>, vector<1x8xf32>
    %336 = vector.broadcast %329 : vector<1x1xf32> to vector<1x8xf32>
    %337 = arith.cmpf oeq, %323, %336 : vector<1x8xf32>
    %cst_74 = arith.constant 0.000000e+00 : f32
    %338 = vector.broadcast %cst_74 : f32 to vector<1x8xf32>
    %339 = arith.select %337, %316, %338 : vector<1x8xi1>, vector<1x8xf32>
    %cst_75 = arith.constant dense<0.000000e+00> : vector<1xf32>
    %340 = vector.multi_reduction <add>, %339, %cst_75 [1] : vector<1x8xf32> to vector<1xf32>
    %341 = vector.shape_cast %340 : vector<1xf32> to vector<1x1xf32>
    %c6_i32 = arith.constant 6 : i32
    %342 = vector.broadcast %c6_i32 : i32 to vector<1x8xi32>
    %343 = arith.cmpi eq, %322, %342 : vector<1x8xi32>
    %344 = vector.shape_cast %341 : vector<1x1xf32> to vector<1x1xf32>
    %345 = vector.broadcast %344 : vector<1x1xf32> to vector<1x8xf32>
    %346 = arith.select %343, %345, %335 : vector<1x8xi1>, vector<1x8xf32>
    %347 = vector.broadcast %341 : vector<1x1xf32> to vector<1x8xf32>
    %348 = arith.cmpf oeq, %323, %347 : vector<1x8xf32>
    %cst_76 = arith.constant 0.000000e+00 : f32
    %349 = vector.broadcast %cst_76 : f32 to vector<1x8xf32>
    %350 = arith.select %348, %300, %349 : vector<1x8xi1>, vector<1x8xf32>
    %cst_77 = arith.constant dense<0.000000e+00> : vector<1xf32>
    %351 = vector.multi_reduction <add>, %350, %cst_77 [1] : vector<1x8xf32> to vector<1xf32>
    %352 = vector.shape_cast %351 : vector<1xf32> to vector<1x1xf32>
    %c5_i32 = arith.constant 5 : i32
    %353 = vector.broadcast %c5_i32 : i32 to vector<1x8xi32>
    %354 = arith.cmpi eq, %322, %353 : vector<1x8xi32>
    %355 = vector.shape_cast %352 : vector<1x1xf32> to vector<1x1xf32>
    %356 = vector.broadcast %355 : vector<1x1xf32> to vector<1x8xf32>
    %357 = arith.select %354, %356, %346 : vector<1x8xi1>, vector<1x8xf32>
    %358 = vector.broadcast %352 : vector<1x1xf32> to vector<1x8xf32>
    %359 = arith.cmpf oeq, %323, %358 : vector<1x8xf32>
    %cst_78 = arith.constant 0.000000e+00 : f32
    %360 = vector.broadcast %cst_78 : f32 to vector<1x8xf32>
    %361 = arith.select %359, %284, %360 : vector<1x8xi1>, vector<1x8xf32>
    %cst_79 = arith.constant dense<0.000000e+00> : vector<1xf32>
    %362 = vector.multi_reduction <add>, %361, %cst_79 [1] : vector<1x8xf32> to vector<1xf32>
    %363 = vector.shape_cast %362 : vector<1xf32> to vector<1x1xf32>
    %c4_i32 = arith.constant 4 : i32
    %364 = vector.broadcast %c4_i32 : i32 to vector<1x8xi32>
    %365 = arith.cmpi eq, %322, %364 : vector<1x8xi32>
    %366 = vector.shape_cast %363 : vector<1x1xf32> to vector<1x1xf32>
    %367 = vector.broadcast %366 : vector<1x1xf32> to vector<1x8xf32>
    %368 = arith.select %365, %367, %357 : vector<1x8xi1>, vector<1x8xf32>
    %369 = vector.broadcast %363 : vector<1x1xf32> to vector<1x8xf32>
    %370 = arith.cmpf oeq, %323, %369 : vector<1x8xf32>
    %cst_80 = arith.constant 0.000000e+00 : f32
    %371 = vector.broadcast %cst_80 : f32 to vector<1x8xf32>
    %372 = arith.select %370, %268, %371 : vector<1x8xi1>, vector<1x8xf32>
    %cst_81 = arith.constant dense<0.000000e+00> : vector<1xf32>
    %373 = vector.multi_reduction <add>, %372, %cst_81 [1] : vector<1x8xf32> to vector<1xf32>
    %374 = vector.shape_cast %373 : vector<1xf32> to vector<1x1xf32>
    %c3_i32 = arith.constant 3 : i32
    %375 = vector.broadcast %c3_i32 : i32 to vector<1x8xi32>
    %376 = arith.cmpi eq, %322, %375 : vector<1x8xi32>
    %377 = vector.shape_cast %374 : vector<1x1xf32> to vector<1x1xf32>
    %378 = vector.broadcast %377 : vector<1x1xf32> to vector<1x8xf32>
    %379 = arith.select %376, %378, %368 : vector<1x8xi1>, vector<1x8xf32>
    %380 = vector.broadcast %374 : vector<1x1xf32> to vector<1x8xf32>
    %381 = arith.cmpf oeq, %323, %380 : vector<1x8xf32>
    %cst_82 = arith.constant 0.000000e+00 : f32
    %382 = vector.broadcast %cst_82 : f32 to vector<1x8xf32>
    %383 = arith.select %381, %252, %382 : vector<1x8xi1>, vector<1x8xf32>
    %cst_83 = arith.constant dense<0.000000e+00> : vector<1xf32>
    %384 = vector.multi_reduction <add>, %383, %cst_83 [1] : vector<1x8xf32> to vector<1xf32>
    %385 = vector.shape_cast %384 : vector<1xf32> to vector<1x1xf32>
    %c2_i32 = arith.constant 2 : i32
    %386 = vector.broadcast %c2_i32 : i32 to vector<1x8xi32>
    %387 = arith.cmpi eq, %322, %386 : vector<1x8xi32>
    %388 = vector.shape_cast %385 : vector<1x1xf32> to vector<1x1xf32>
    %389 = vector.broadcast %388 : vector<1x1xf32> to vector<1x8xf32>
    %390 = arith.select %387, %389, %379 : vector<1x8xi1>, vector<1x8xf32>
    %391 = vector.broadcast %385 : vector<1x1xf32> to vector<1x8xf32>
    %392 = arith.cmpf oeq, %323, %391 : vector<1x8xf32>
    %cst_84 = arith.constant 0.000000e+00 : f32
    %393 = vector.broadcast %cst_84 : f32 to vector<1x8xf32>
    %394 = arith.select %392, %236, %393 : vector<1x8xi1>, vector<1x8xf32>
    %cst_85 = arith.constant dense<0.000000e+00> : vector<1xf32>
    %395 = vector.multi_reduction <add>, %394, %cst_85 [1] : vector<1x8xf32> to vector<1xf32>
    %396 = vector.shape_cast %395 : vector<1xf32> to vector<1x1xf32>
    %c1_i32 = arith.constant 1 : i32
    %397 = vector.broadcast %c1_i32 : i32 to vector<1x8xi32>
    %398 = arith.cmpi eq, %322, %397 : vector<1x8xi32>
    %399 = vector.shape_cast %396 : vector<1x1xf32> to vector<1x1xf32>
    %400 = vector.broadcast %399 : vector<1x1xf32> to vector<1x8xf32>
    %401 = arith.select %398, %400, %390 : vector<1x8xi1>, vector<1x8xf32>
    %402 = vector.broadcast %396 : vector<1x1xf32> to vector<1x8xf32>
    %403 = arith.cmpf oeq, %323, %402 : vector<1x8xf32>
    %cst_86 = arith.constant 0.000000e+00 : f32
    %404 = vector.broadcast %cst_86 : f32 to vector<1x8xf32>
    %405 = arith.select %403, %220, %404 : vector<1x8xi1>, vector<1x8xf32>
    %cst_87 = arith.constant dense<0.000000e+00> : vector<1xf32>
    %406 = vector.multi_reduction <add>, %405, %cst_87 [1] : vector<1x8xf32> to vector<1xf32>
    %407 = vector.shape_cast %406 : vector<1xf32> to vector<1x1xf32>
    %c0_i32 = arith.constant 0 : i32
    %408 = vector.broadcast %c0_i32 : i32 to vector<1x8xi32>
    %409 = arith.cmpi eq, %322, %408 : vector<1x8xi32>
    %410 = vector.shape_cast %407 : vector<1x1xf32> to vector<1x1xf32>
    %411 = vector.broadcast %410 : vector<1x1xf32> to vector<1x8xf32>
    %412 = arith.select %409, %411, %401 : vector<1x8xi1>, vector<1x8xf32>
    %413 = vector.broadcast %407 : vector<1x1xf32> to vector<1x8xf32>
    %414 = arith.cmpf oeq, %323, %413 : vector<1x8xf32>
    %cst_88 = arith.constant 0.000000e+00 : f32
    %415 = vector.broadcast %cst_88 : f32 to vector<1x8xf32>
    %416 = arith.select %414, %204, %415 : vector<1x8xi1>, vector<1x8xf32>
    %cst_89 = arith.constant dense<0.000000e+00> : vector<1xf32>
    %417 = vector.multi_reduction <add>, %416, %cst_89 [1] : vector<1x8xf32> to vector<1xf32>
    %418 = vector.shape_cast %417 : vector<1xf32> to vector<1x1xf32>
    %419 = arith.fptosi %412 : vector<1x8xf32> to vector<1x8xi32>
    %c0_90 = arith.constant 0 : index
    %c0_91 = arith.constant 0 : index
    %420 = vector.load %arg2[%c0_90, %c0_91] : memref<1x8xi32, #tpu.memory_space<vmem>>, vector<1x8xi32>
    tpu.vector_store %arg2[%c0_90, %c0_91], %419 {strides = array<i32>} : memref<1x8xi32, #tpu.memory_space<vmem>>, vector<1x8xi32>,
    %c0_i32_92 = arith.constant 0 : i32
    %421 = vector.broadcast %c0_i32_92 : i32 to vector<1x8xi32>
    %422 = arith.cmpi eq, %322, %421 : vector<1x8xi32>
    %c1_i32_93 = arith.constant 1 : i32
    %423 = vector.broadcast %c1_i32_93 : i32 to vector<1x8xi32>
    %424 = arith.cmpi eq, %322, %423 : vector<1x8xi32>
    %cst_94 = arith.constant 0.000000e+00 : f32
    %425 = vector.shape_cast %418 : vector<1x1xf32> to vector<1x1xf32>
    %426 = vector.broadcast %425 : vector<1x1xf32> to vector<1x8xf32>
    %427 = vector.broadcast %cst_94 : f32 to vector<1x8xf32>
    %428 = arith.select %424, %426, %427 : vector<1x8xi1>, vector<1x8xf32>
    %429 = vector.shape_cast %321 : vector<1x1xf32> to vector<1x1xf32>
    %430 = vector.broadcast %429 : vector<1x1xf32> to vector<1x8xf32>
    %431 = arith.select %422, %430, %428 : vector<1x8xi1>, vector<1x8xf32>
    %c0_95 = arith.constant 0 : index
    %c0_96 = arith.constant 0 : index
    %432 = vector.load %arg3[%c0_95, %c0_96] : memref<1x8xf32, #tpu.memory_space<vmem>>, vector<1x8xf32>
    tpu.vector_store %arg3[%c0_95, %c0_96], %431 {strides = array<i32>} : memref<1x8xf32, #tpu.memory_space<vmem>>, vector<1x8xf32>,
    return
  }
}

</mosaic_0001>

<bundles_post_ra>
// kernel: forward_device.1
= control target key start
LH: loop header
LB: loop body
LE: loop exit
PB: predicated region body
PF: predicated region fallthrough
CT: control target
= control target key end

     0   :  { %9 = vsyncpa [#allocation3], 0  ;;  %v2378_v3 = vmov 0.0|0.0   ;;  %vm2379_vm0 = vmmov 0   ;;  %v2380_v11 = vmov 0.0   ;;  %s2890_s0 = inlined_call_operand.vmem [shape: f32[8,32], index: 0, kind: input, shape index: {}]   ;;  %s2891_s1 = inlined_call_operand.vmem [shape: f32[128,128], index: 1, kind: input, shape index: {}]   ;;  %s2892_s2 = inlined_call_operand.hbm [shape: s32[1,8], index: 2, kind: output, shape index: {0}]   ;;  %s2893_s3 = inlined_call_operand.hbm [shape: f32[1,8], index: 3, kind: output, shape index: {1}]  }
   0x1   :  { %v15_v0 = vld [vmem:[%s2891_s1] sm:$0xff]  ;;  %v16_v1 = vld [vmem:[%s2891_s1 + $0x8] sm:$0xff]  ;;  %2196 = vmatprep.subr.bf16.mxu0 %v2378_v3  ;;  %2202 = vmatprep.subr.bf16.mxu1 %v2378_v3  ;;  %v17_v6 = vld [vmem:[%s2891_s1 + $0x10] sm:$0xff] }
   0x2   :  { %v19_v2 = vld [vmem:[%s2891_s1 + $0x20] sm:$0xff]  ;;  %v2197_v4 = vpack.c.bf16 %v16_v1, %v15_v0  ;;  %v20_v5 = vld [vmem:[%s2891_s1 + $0x28] sm:$0xff]  ;;  %v18_v7 = vld [vmem:[%s2891_s1 + $0x18] sm:$0xff]  ;;  %2054 = vmatprep.mubr.msk.f32.mxu0 %vm2379_vm0, %v2380_v11  ;;  %2065 = vmatprep.mubr.msk.f32.mxu1 %vm2379_vm0, %v2380_v11 }
   0x3   :  { %v2426_v8 = vpack.c.bf16 %v20_v5, %v19_v2  ;;  %v21_v9 = vld [vmem:[%s2891_s1 + $0x30] sm:$0xff]  ;;  %v22_v10 = vld [vmem:[%s2891_s1 + $0x38] sm:$0xff]  ;;  %v2200_v12 = vpack.c.bf16 %v18_v7, %v17_v6 }
   0x4   :  { %2198 = vmatpush3.bf16.msra.mxu0 %v2197_v4 }
   0x5   :  { %10 = vsyncpa [#allocation5], 0  ;;  %2204 = vmatpush3.bf16.msra.mxu1 %v2426_v8  ;;  %2199 = vmatprep.subr.bf16.mxu0 %v2378_v3  ;;  %v2440_v13 = vpack.c.bf16 %v22_v10, %v21_v9  ;;  %v32_v14 = vld [vmem:[%s2890_s0] sm:$0xff]  ;;  %vm37_vm1 = vcmask 261120   ;;  %s2381_s4 = smov 64   ;;  %s2382_s5 = smov 32  }
   0x6   :  { %2205 = vmatprep.subr.bf16.mxu1 %v2378_v3  ;;  %v1952_v15 = vld [vmem:[%s2891_s1 + $0x40] ss:$0 sm:$0xff]  ;;  %vm957_vm2 = vcmask 1040384   ;;  %vm959_vm3 = vcmask 1041408   ;;  %vm961_vm4 = vcmask 1042432   ;;  %vm963_vm5 = vcmask 1043456  }
   0x7   :  { %vm965_vm6 = vcmask 1044480   ;;  %vm967_vm7 = vcmask 1045504   ;;  %vm1093_vm8 = vcmask 64512   ;;  %vm969_vm10 = vcmask 1046528  }
   0x8   :  { %2201 = vmatpush3.bf16.msra.mxu0 %v2200_v12  ;;  %vm1003_vm11 = vcmask 130048  }
   0x9   :  { %2207 = vmatpush3.bf16.msra.mxu1 %v2440_v13  ;;  %2208 = vmatprep.subr.bf16.mxu0 %v2378_v3 }
   0xa   :  { %2214 = vmatprep.subr.bf16.mxu1 %v2378_v3 }
   0xb   :  { %2055 = vmatmul.mubr.msk.f32.vlgmr.msra.gmra.mrb[0].mxu0 %vm37_vm1, %v32_v14 }
   0xc   :  { %2066 = vmatmul.mubr.f32.vlgmr.msra.gmra.mrb[0].mxu1 %v2380_v11  ;;  %2210 = vmatpush3.bf16.msra.mxu0 %v2426_v8 }
   0xd   :  { %2211 = vmatprep.subr.bf16.mxu0 %v2378_v3  ;;  %2076 = vmatprep.mubr.msk.f32.mxu0 %vm2379_vm0, %v2380_v11 }
   0xe   :  { %2216 = vmatpush3.bf16.msra.mxu1 %v2426_v8  ;;  %2087 = vmatprep.mubr.msk.f32.mxu1 %vm2379_vm0, %v2380_v11 }
   0xf   :  { %2217 = vmatprep.subr.bf16.mxu1 %v2378_v3 }
  0x10   :  { %2213 = vmatpush3.bf16.msra.mxu0 %v2440_v13 }
  0x11   :  { %2220 = vmatprep.subr.bf16.mxu0 %v2378_v3 }
  0x12   :  { %2219 = vmatpush3.bf16.msra.mxu1 %v2440_v13 }
  0x13   :  { %2226 = vmatprep.subr.bf16.mxu1 %v2378_v3 }
  0xde   :  { %v107_v16 = vpop.f32.mrb[0].mxu0 }
  0xdf   :  { %v2466_v17 = vadd.f32 %v1952_v15, %v107_v16  ;;  %v2056_v18 = vpop.f32.mrb[1].mxu0  ;;  %v180_v19 = vpop.f32.mrb[0].mxu1 }
  0xe0   :  { %v2067_v20 = vpop.f32.mrb[1].mxu1 }
  0xe1   :  { %v184_v21 = vadd.f32 %v180_v19, %v2466_v17 }
  0xe3   :  { %2266 = vtanh.f32 %v184_v21  ;;  %v1954_v23 = vmul.f32 -1.442695, %v184_v21 }
  0xe5   :  { %2268 = vpow2.f32 %v1954_v23 }
  0xed   :  { %v2267_v22 = vpop.eup %2266 }
  0xee   :  { %194 = vrot.lane.b32.xlu0 %v2267_v22, %s2381_s4 }
  0xef   :  { %v2269_v24 = vpop.eup %2268 }
  0xf0   :  { %v188_v25 = vadd.f32 1.0, %v2269_v24 }
  0xf2   :  { %2270 = vrcp.f32 %v188_v25 }
  0xfc   :  { %v2271_v26 = vpop.eup %2270 }
  0xfd   :  { %v192_v29 = vmul.f32 0.0, %v2271_v26 }
 0x160   :  { %v195_v27 = vpop.permute.xlu0 %194 }
 0x161   :  { %v197_v28 = vmul.f32 %v2271_v26, %v195_v27 }
 0x163   :  { %199 = vrot.lane.b32.xlu0 %v197_v28, %s2382_s5 }
 0x1d5   :  { %v200_v30 = vpop.permute.xlu0 %199 }
 0x1d6   :  { %v202_v31 = vadd.f32 %v200_v30, %v192_v29 }
 0x1d8   :  { %2272 = vtanh.f32 %v202_v31  ;;  %v296_v47 = vrot.slane %v202_v31, 7 }
 0x1e2   :  { %v2273_v32 = vpop.eup %2272 }
 0x1e3   :  { %205 = vrot.lane.b32.xlu1 %v2273_v32, %s2381_s4 }
 0x255   :  { %v206_v33 = vpop.permute.xlu1 %205 }
 0x256   :  { %v2472_v34 = vmul.f32 %v2271_v26, %v206_v33 }
 0x258   :  { %210 = vrot.lane.b32.xlu1 %v2472_v34, %s2382_s5 }
 0x2ca   :  { %v211_v35 = vpop.permute.xlu1 %210 }
 0x2cb   :  { %2077 = vmatmul.mubr.msk.f32.vlgmr.msra.gmra.mrb[2].mxu0 %vm37_vm1, %v211_v35 }
 0x2cc   :  { %2222 = vmatpush3.bf16.msra.mxu0 %v2426_v8  ;;  %2098 = vmatprep.mubr.msk.f32.mxu0 %vm2379_vm0, %v2380_v11 }
 0x2cd   :  { %2223 = vmatprep.subr.bf16.mxu0 %v2378_v3 }
 0x2d0   :  { %2225 = vmatpush3.bf16.msra.mxu0 %v2440_v13 }
 0x2d1   :  { %2232 = vmatprep.subr.bf16.mxu0 %v2378_v3 }
 0x39e   :  { %v280_v36 = vpop.f32.mrb[2].mxu0 }
 0x39f   :  { %v285_v37 = vrot.slane %v280_v36, 7  ;;  %v2078_v38 = vpop.f32.mrb[3].mxu0 }
 0x3a1   :  { %v287_v39 = vadd.f32 %v285_v37, %v2466_v17 }
 0x3a3   :  { %2274 = vtanh.f32 %v287_v39  ;;  %v1956_v41 = vmul.f32 -1.442695, %v287_v39 }
 0x3a5   :  { %2276 = vpow2.f32 %v1956_v41 }
 0x3ad   :  { %v2275_v40 = vpop.eup %2274 }
 0x3ae   :  { %300 = vrot.lane.b32.xlu0 %v2275_v40, %s2381_s4 }
 0x3af   :  { %v2277_v42 = vpop.eup %2276 }
 0x3b0   :  { %v291_v43 = vadd.f32 1.0, %v2277_v42 }
 0x3b2   :  { %2278 = vrcp.f32 %v291_v43 }
 0x3bc   :  { %v2279_v44 = vpop.eup %2278 }
 0x3bd   :  { %v298_v48 = vmul.f32 %v2279_v44, %v296_v47 }
 0x420   :  { %v301_v45 = vpop.permute.xlu0 %300 }
 0x421   :  { %v303_v46 = vmul.f32 %v2279_v44, %v301_v45 }
 0x423   :  { %305 = vrot.lane.b32.xlu1 %v303_v46, %s2382_s5 }
 0x495   :  { %v306_v49 = vpop.permute.xlu1 %305 }
 0x496   :  { %v308_v50 = vadd.f32 %v306_v49, %v298_v48 }
 0x498   :  { %2280 = vtanh.f32 %v308_v50  ;;  %v403_v4 = vrot.slane %v308_v50, 7 }
 0x4a2   :  { %v2281_v51 = vpop.eup %2280 }
 0x4a3   :  { %311 = vrot.lane.b32.xlu0 %v2281_v51, %s2381_s4 }
 0x515   :  { %v312_v52 = vpop.permute.xlu0 %311 }
 0x516   :  { %v2487_v53 = vmul.f32 %v2279_v44, %v312_v52 }
 0x518   :  { %v316_v54 = vrot.slane %v2487_v53, 1  ;;  %v958_v14 = vsel %vm957_vm2, %v2472_v34, %v2487_v53 }
 0x51a   :  { %317 = vrot.lane.b32.xlu1 %v316_v54, %s2382_s5 }
 0x58c   :  { %v318_v55 = vpop.permute.xlu1 %317 }
 0x58d   :  { %2088 = vmatmul.mubr.msk.f32.vlgmr.msra.gmra.mrb[2].mxu1 %vm37_vm1, %v318_v55 }
 0x58e   :  { %2228 = vmatpush3.bf16.msra.mxu1 %v2426_v8  ;;  %2109 = vmatprep.mubr.msk.f32.mxu1 %vm2379_vm0, %v2380_v11 }
 0x58f   :  { %2229 = vmatprep.subr.bf16.mxu1 %v2378_v3 }
 0x592   :  { %2231 = vmatpush3.bf16.msra.mxu1 %v2440_v13 }
 0x593   :  { %2238 = vmatprep.subr.bf16.mxu1 %v2378_v3 }
 0x660   :  { %v387_v56 = vpop.f32.mrb[2].mxu1 }
 0x661   :  { %v392_v57 = vrot.slane %v387_v56, 6  ;;  %v2089_v58 = vpop.f32.mrb[3].mxu1 }
 0x663   :  { %v394_v59 = vadd.f32 %v392_v57, %v2466_v17 }
 0x665   :  { %2282 = vtanh.f32 %v394_v59  ;;  %v1958_v61 = vmul.f32 -1.442695, %v394_v59 }
 0x667   :  { %2284 = vpow2.f32 %v1958_v61 }
 0x66f   :  { %v2283_v60 = vpop.eup %2282 }
 0x670   :  { %407 = vrot.lane.b32.xlu0 %v2283_v60, %s2381_s4 }
 0x671   :  { %v2285_v62 = vpop.eup %2284 }
 0x672   :  { %v398_v63 = vadd.f32 1.0, %v2285_v62 }
 0x674   :  { %2286 = vrcp.f32 %v398_v63 }
 0x67e   :  { %v2287_v0 = vpop.eup %2286 }
 0x67f   :  { %v405_v5 = vmul.f32 %v2287_v0, %v403_v4 }
 0x6e2   :  { %v408_v1 = vpop.permute.xlu0 %407 }
 0x6e3   :  { %v410_v2 = vmul.f32 %v2287_v0, %v408_v1 }
 0x6e5   :  { %412 = vrot.lane.b32.xlu1 %v410_v2, %s2382_s5 }
 0x757   :  { %v413_v6 = vpop.permute.xlu1 %412 }
 0x758   :  { %v415_v7 = vadd.f32 %v413_v6, %v405_v5 }
 0x75a   :  { %2288 = vtanh.f32 %v415_v7  ;;  %v510_v30 = vrot.slane %v415_v7, 7 }
 0x764   :  { %v2289_v9 = vpop.eup %2288 }
 0x765   :  { %418 = vrot.lane.b32.xlu0 %v2289_v9, %s2381_s4 }
 0x7d7   :  { %v419_v10 = vpop.permute.xlu0 %418 }
 0x7d8   :  { %v2502_v12 = vmul.f32 %v2287_v0, %v419_v10 }
 0x7da   :  { %v960_v15 = vsel %vm959_vm3, %v958_v14, %v2502_v12  ;;  %v423_v16 = vrot.slane %v2502_v12, 2 }
 0x7dc   :  { %424 = vrot.lane.b32.xlu1 %v423_v16, %s2382_s5 }
 0x84e   :  { %v425_v18 = vpop.permute.xlu1 %424 }
 0x84f   :  { %2099 = vmatmul.mubr.msk.f32.vlgmr.msra.gmra.mrb[4].mxu0 %vm37_vm1, %v425_v18 }
 0x850   :  { %2234 = vmatpush3.bf16.msra.mxu0 %v2426_v8  ;;  %2120 = vmatprep.mubr.msk.f32.mxu0 %vm2379_vm0, %v2380_v11 }
 0x851   :  { %2235 = vmatprep.subr.bf16.mxu0 %v2378_v3 }
 0x854   :  { %2237 = vmatpush3.bf16.msra.mxu0 %v2440_v13 }
 0x855   :  { %2244 = vmatprep.subr.bf16.mxu0 %v2378_v3 }
 0x922   :  { %v494_v19 = vpop.f32.mrb[4].mxu0 }
 0x923   :  { %v499_v20 = vrot.slane %v494_v19, 5  ;;  %v2100_v21 = vpop.f32.mrb[5].mxu0 }
 0x925   :  { %v501_v22 = vadd.f32 %v499_v20, %v2466_v17 }
 0x927   :  { %2290 = vtanh.f32 %v501_v22  ;;  %v1960_v24 = vmul.f32 -1.442695, %v501_v22 }
 0x929   :  { %2292 = vpow2.f32 %v1960_v24 }
 0x931   :  { %v2291_v23 = vpop.eup %2290 }
 0x932   :  { %514 = vrot.lane.b32.xlu0 %v2291_v23, %s2381_s4 }
 0x933   :  { %v2293_v25 = vpop.eup %2292 }
 0x934   :  { %v505_v26 = vadd.f32 1.0, %v2293_v25 }
 0x936   :  { %2294 = vrcp.f32 %v505_v26 }
 0x940   :  { %v2295_v27 = vpop.eup %2294 }
 0x941   :  { %v512_v31 = vmul.f32 %v2295_v27, %v510_v30 }
 0x9a4   :  { %v515_v28 = vpop.permute.xlu0 %514 }
 0x9a5   :  { %v517_v29 = vmul.f32 %v2295_v27, %v515_v28 }
 0x9a7   :  { %519 = vrot.lane.b32.xlu1 %v517_v29, %s2382_s5 }
 0xa19   :  { %v520_v32 = vpop.permute.xlu1 %519 }
 0xa1a   :  { %v522_v33 = vadd.f32 %v520_v32, %v512_v31 }
 0xa1c   :  { %2296 = vtanh.f32 %v522_v33  ;;  %v617_v52 = vrot.slane %v522_v33, 7 }
 0xa26   :  { %v2297_v35 = vpop.eup %2296 }
 0xa27   :  { %525 = vrot.lane.b32.xlu0 %v2297_v35, %s2381_s4 }
 0xa99   :  { %v526_v36 = vpop.permute.xlu0 %525 }
 0xa9a   :  { %v2522_v37 = vmul.f32 %v2295_v27, %v526_v36 }
 0xa9c   :  { %v962_v38 = vsel %vm961_vm4, %v960_v15, %v2522_v37  ;;  %v530_v39 = vrot.slane %v2522_v37, 3 }
 0xa9e   :  { %531 = vrot.lane.b32.xlu1 %v530_v39, %s2382_s5 }
 0xb10   :  { %v532_v40 = vpop.permute.xlu1 %531 }
 0xb11   :  { %2110 = vmatmul.mubr.msk.f32.vlgmr.msra.gmra.mrb[4].mxu1 %vm37_vm1, %v532_v40 }
 0xb12   :  { %2240 = vmatpush3.bf16.msra.mxu1 %v2426_v8  ;;  %2131 = vmatprep.mubr.msk.f32.mxu1 %vm2379_vm0, %v2380_v11 }
 0xb13   :  { %2241 = vmatprep.subr.bf16.mxu1 %v2378_v3 }
 0xb16   :  { %2243 = vmatpush3.bf16.msra.mxu1 %v2440_v13 }
 0xb17   :  { %2250 = vmatprep.subr.bf16.mxu1 %v2378_v3 }
 0xbe4   :  { %v601_v41 = vpop.f32.mrb[4].mxu1 }
 0xbe5   :  { %v606_v42 = vrot.slane %v601_v41, 4  ;;  %v2111_v43 = vpop.f32.mrb[5].mxu1 }
 0xbe7   :  { %v608_v44 = vadd.f32 %v606_v42, %v2466_v17 }
 0xbe9   :  { %2298 = vtanh.f32 %v608_v44  ;;  %v1962_v46 = vmul.f32 -1.442695, %v608_v44 }
 0xbeb   :  { %2300 = vpow2.f32 %v1962_v46 }
 0xbf3   :  { %v2299_v45 = vpop.eup %2298 }
 0xbf4   :  { %621 = vrot.lane.b32.xlu0 %v2299_v45, %s2381_s4 }
 0xbf5   :  { %v2301_v47 = vpop.eup %2300 }
 0xbf6   :  { %v612_v48 = vadd.f32 1.0, %v2301_v47 }
 0xbf8   :  { %2302 = vrcp.f32 %v612_v48 }
 0xc02   :  { %v2303_v49 = vpop.eup %2302 }
 0xc03   :  { %v619_v54 = vmul.f32 %v2303_v49, %v617_v52 }
 0xc66   :  { %v622_v50 = vpop.permute.xlu0 %621 }
 0xc67   :  { %v624_v51 = vmul.f32 %v2303_v49, %v622_v50 }
 0xc69   :  { %626 = vrot.lane.b32.xlu1 %v624_v51, %s2382_s5 }
 0xcdb   :  { %v627_v55 = vpop.permute.xlu1 %626 }
 0xcdc   :  { %v629_v56 = vadd.f32 %v627_v55, %v619_v54 }
 0xcde   :  { %2304 = vtanh.f32 %v629_v56 }
 0xce8   :  { %v2305_v57 = vpop.eup %2304 }
 0xce9   :  { %632 = vrot.lane.b32.xlu0 %v2305_v57, %s2381_s4 }
 0xd5b   :  { %v633_v58 = vpop.permute.xlu0 %632 }
 0xd5c   :  { %v2539_v59 = vmul.f32 %v2303_v49, %v633_v58 }
 0xd5e   :  { %v964_v60 = vsel %vm963_vm5, %v962_v38, %v2539_v59  ;;  %v637_v61 = vrot.slane %v2539_v59, 4 }
 0xd60   :  { %638 = vrot.lane.b32.xlu1 %v637_v61, %s2382_s5 }
 0xdd2   :  { %v639_v62 = vpop.permute.xlu1 %638 }
 0xdd3   :  { %2121 = vmatmul.mubr.msk.f32.vlgmr.msra.gmra.mrb[6].mxu0 %vm37_vm1, %v639_v62 }
 0xdd4   :  { %2246 = vmatpush3.bf16.msra.mxu0 %v2426_v8  ;;  %2142 = vmatprep.mubr.msk.f32.mxu0 %vm2379_vm0, %v2380_v11 }
 0xdd5   :  { %2247 = vmatprep.subr.bf16.mxu0 %v2378_v3 }
 0xdd8   :  { %2249 = vmatpush3.bf16.msra.mxu0 %v2440_v13  ;;  %v724_v13 = vrot.slane %v629_v56, 7 }
 0xdd9   :  { %2156 = vmatprep.subr.mxu0 %v2380_v11 }
 0xea6   :  { %v708_v63 = vpop.f32.mrb[6].mxu0 }
 0xea7   :  { %v713_v0 = vrot.slane %v708_v63, 3  ;;  %v2122_v1 = vpop.f32.mrb[7].mxu0 }
 0xea8   :  { %v2383_v1 = vmov 1.0  }
 0xea9   :  { %v715_v2 = vadd.f32 %v713_v0, %v2466_v17 }
 0xeab   :  { %2306 = vtanh.f32 %v715_v2  ;;  %v1964_v5 = vmul.f32 -1.442695, %v715_v2  ;;  %v1971_v2 = vld [vmem:[%s2891_s1 + $0x72] ss:$0 sm:$0xff] }
 0xead   :  { %2308 = vpow2.f32 %v1964_v5 }
 0xeb5   :  { %v2307_v4 = vpop.eup %2306 }
 0xeb6   :  { %728 = vrot.lane.b32.xlu0 %v2307_v4, %s2381_s4 }
 0xeb7   :  { %v2309_v8 = vpop.eup %2308 }
 0xeb8   :  { %v719_v6 = vadd.f32 1.0, %v2309_v8 }
 0xeba   :  { %2310 = vrcp.f32 %v719_v6 }
 0xec4   :  { %v2311_v7 = vpop.eup %2310 }
 0xec5   :  { %v726_v14 = vmul.f32 %v2311_v7, %v724_v13 }
 0xf28   :  { %v729_v9 = vpop.permute.xlu0 %728 }
 0xf29   :  { %v731_v10 = vmul.f32 %v2311_v7, %v729_v9  ;;  %v25_v9 = vld [vmem:[%s2891_s1 + $0x50] sm:$0xff] }
 0xf2b   :  { %733 = vrot.lane.b32.xlu1 %v731_v10, %s2382_s5  ;;  %v26_v10 = vld [vmem:[%s2891_s1 + $0x58] sm:$0xff] }
 0xf9d   :  { %v734_v15 = vpop.permute.xlu1 %733 }
 0xf9e   :  { %v736_v16 = vadd.f32 %v734_v15, %v726_v14  ;;  %v27_v14 = vld [vmem:[%s2891_s1 + $0x60] sm:$0xff] }
 0xf9f   :  { %v2254_v15 = vpack.c.bf16 %v27_v14, %v26_v10 }
 0xfa0   :  { %2312 = vtanh.f32 %v736_v16  ;;  %v831_v36 = vrot.slane %v736_v16, 7 }
 0xfaa   :  { %v2313_v18 = vpop.eup %2312 }
 0xfab   :  { %739 = vrot.lane.b32.xlu0 %v2313_v18, %s2381_s4 }
0x101d   :  { %v740_v19 = vpop.permute.xlu0 %739 }
0x101e   :  { %v2556_v20 = vmul.f32 %v2311_v7, %v740_v19  ;;  %v24_v7 = vld [vmem:[%s2891_s1 + $0x48] sm:$0xff] }
0x101f   :  { %v2251_v13 = vpack.c.bf16 %v25_v9, %v24_v7 }
0x1020   :  { %v966_v21 = vsel %vm965_vm6, %v964_v60, %v2556_v20  ;;  %v744_v22 = vrot.slane %v2556_v20, 5 }
0x1022   :  { %745 = vrot.lane.b32.xlu1 %v744_v22, %s2382_s5 }
0x1094   :  { %v746_v23 = vpop.permute.xlu1 %745 }
0x1095   :  { %2132 = vmatmul.mubr.msk.f32.vlgmr.msra.gmra.mrb[6].mxu1 %vm37_vm1, %v746_v23  ;;  %v976_v23 = vrot.slane %v2556_v20, 3  ;;  %v986_v20 = vrot.slane %v2472_v34, 1  ;;  %v2643_v34 = vld [vmem:[%s2891_s1 + $0x68] sm:$0xff] }
0x1096   :  { %2153 = vmatprep.mubr.msk.f32.mxu1 %vm2379_vm0, %v2380_v11  ;;  %2252 = vmatpush3.bf16.msra.mxu1 %v2251_v13 }
0x1097   :  { %2253 = vmatprep.subr.bf16.mxu1 %v2378_v3  ;;  %v980_v3 = vrot.slane %v2522_v37, 7 }
0x109a   :  { %2255 = vmatpush3.bf16.msra.mxu1 %v2254_v15 }
0x109b   :  { %2161 = vmatprep.subr.mxu1 %v2380_v11 }
0x1168   :  { %v815_v24 = vpop.f32.mrb[6].mxu1 }
0x1169   :  { %v820_v25 = vrot.slane %v815_v24, 2  ;;  %v2133_v26 = vpop.f32.mrb[7].mxu1  ;;  %v978_v24 = vrot.slane %v2539_v59, 1 }
0x116b   :  { %v822_v27 = vadd.f32 %v820_v25, %v2466_v17 }
0x116d   :  { %2314 = vtanh.f32 %v822_v27  ;;  %v1966_v29 = vmul.f32 -1.442695, %v822_v27  ;;  %v982_v27 = vrot.slane %v2502_v12, 5 }
0x116f   :  { %2316 = vpow2.f32 %v1966_v29  ;;  %v984_v29 = vrot.slane %v2487_v53, 3 }
0x1177   :  { %v2315_v28 = vpop.eup %2314 }
0x1178   :  { %835 = vrot.lane.b32.xlu0 %v2315_v28, %s2381_s4 }
0x1179   :  { %v2317_v30 = vpop.eup %2316 }
0x117a   :  { %v826_v31 = vadd.f32 1.0, %v2317_v30 }
0x117c   :  { %2318 = vrcp.f32 %v826_v31 }
0x1186   :  { %v2319_v32 = vpop.eup %2318 }
0x1187   :  { %v833_v38 = vmul.f32 %v2319_v32, %v831_v36 }
0x11ea   :  { %v836_v33 = vpop.permute.xlu0 %835 }
0x11eb   :  { %v838_v35 = vmul.f32 %v2319_v32, %v836_v33 }
0x11ed   :  { %840 = vrot.lane.b32.xlu1 %v838_v35, %s2382_s5 }
0x125f   :  { %v841_v39 = vpop.permute.xlu1 %840 }
0x1260   :  { %v843_v40 = vadd.f32 %v841_v39, %v833_v38 }
0x1262   :  { %2320 = vtanh.f32 %v843_v40  ;;  %v938_v60 = vrot.slane %v843_v40, 7 }
0x126c   :  { %v2321_v41 = vpop.eup %2320 }
0x126d   :  { %846 = vrot.lane.b32.xlu0 %v2321_v41, %s2381_s4 }
0x12df   :  { %v847_v42 = vpop.permute.xlu0 %846 }
0x12e0   :  { %v2569_v43 = vmul.f32 %v2319_v32, %v847_v42 }
0x12e2   :  { %v851_v44 = vrot.slane %v2569_v43, 6  ;;  %v968_v45 = vsel %vm967_vm7, %v966_v21, %v2569_v43  ;;  %v974_v19 = vrot.slane %v2569_v43, 5 }
0x12e4   :  { %852 = vrot.lane.b32.xlu1 %v851_v44, %s2382_s5  ;;  %v1969_v44 = vld [vmem:[%s2891_s1 + $0x70] ss:$0 sm:$0xff] }
0x1356   :  { %v853_v46 = vpop.permute.xlu1 %852 }
0x1357   :  { %2143 = vmatmul.mubr.msk.f32.vlgmr.msra.gmra.mrb[8].mxu0 %vm37_vm1, %v853_v46 }
0x1358   :  { %2158 = vmatprep.mubr.msk.f32.mxu0 %vm2379_vm0, %v2380_v11  ;;  %2157 = vmatpush3.msra.mxu0 %v2383_v1 }
0x1359   :  { %2166 = vmatprep.subr.mxu0 %v2380_v11 }
0x142a   :  { %v922_v47 = vpop.f32.mrb[8].mxu0 }
0x142b   :  { %v927_v48 = vrot.slane %v922_v47, 1  ;;  %v2144_v49 = vpop.f32.mrb[9].mxu0 }
0x142d   :  { %v929_v50 = vadd.f32 %v927_v48, %v2466_v17  ;;  %v1082_v17 = vlaneseq }
0x142f   :  { %2322 = vtanh.f32 %v929_v50  ;;  %v1968_v52 = vmul.f32 -1.442695, %v929_v50  ;;  %v2586_v4 = vshrl.u32 %v1082_v17, 7  ;;  %v2588_v5 = vand.u32 127, %v1082_v17 }
0x1431   :  { %2324 = vpow2.f32 %v1968_v52  ;;  %vm2593_vm9 = vcmp.eq.s32.totalorder %v2586_v4, %v2588_v5  ;;  %v1186_v49 = vsub.s32 0, %v2586_v4 }
0x1432   :  { %v1092_v6 = vsel %vm2593_vm9, %v1971_v2, 0.0 }
0x1433   :  { %2159 = vmatmul.mubr.msk.f32.vlgmr.msra.gmra.mrb[10].mxu0 %vm1093_vm8, %v1092_v6 }
0x1434   :  { %2167 = vmatpush3.msra.mxu0 %v2383_v1  ;;  %2168 = vmatprep.mubr.msk.f32.mxu0 %vm2379_vm0, %v2380_v11 }
0x1435   :  { %2176 = vmatprep.subr.mxu0 %v2380_v11 }
0x1439   :  { %v2323_v51 = vpop.eup %2322 }
0x143a   :  { %942 = vrot.lane.b32.xlu0 %v2323_v51, %s2381_s4 }
0x143b   :  { %v2325_v54 = vpop.eup %2324 }
0x143c   :  { %v933_v55 = vadd.f32 1.0, %v2325_v54 }
0x143e   :  { %2326 = vrcp.f32 %v933_v55 }
0x1448   :  { %v2327_v56 = vpop.eup %2326 }
0x1449   :  { %v940_v61 = vmul.f32 %v2327_v56, %v938_v60 }
0x14ac   :  { %v943_v57 = vpop.permute.xlu0 %942 }
0x14ad   :  { %v945_v58 = vmul.f32 %v2327_v56, %v943_v57 }
0x14af   :  { %947 = vrot.lane.b32.xlu1 %v945_v58, %s2382_s5 }
0x1506   :  { %v1163_v37 = vpop.f32.mrb[10].mxu0 }
0x1507   :  { %v2160_v33 = vpop.f32.mrb[11].mxu0  ;;  %v2646_v53 = vadd.f32 %v1163_v37, %v2643_v34 }
0x1508   :  { %v1471_v33 = vsub.s32 3, %v2586_v4 }
0x1509   :  { %v1167_v38 = vsel %vm1093_vm8, %v2646_v53, -inf }
0x150a   :  { %v1168_v39 = vrot.slane %v1167_v38, 4 }
0x150c   :  { %v1169_v40 = vmax.f32 %v1167_v38, %v1168_v39 }
0x150e   :  { %v1170_v41 = vrot.slane %v1169_v40, 2 }
0x1510   :  { %v1171_v42 = vmax.f32 %v1169_v40, %v1170_v41 }
0x1512   :  { %v1172_v43 = vrot.slane %v1171_v42, 1 }
0x1514   :  { %v2653_v46 = vmax.f32 %v1171_v42, %v1172_v43 }
0x1521   :  { %v948_v62 = vpop.permute.xlu1 %947 }
0x1522   :  { %v950_v63 = vadd.f32 %v948_v62, %v940_v61 }
0x1524   :  { %2328 = vtanh.f32 %v950_v63 }
0x152e   :  { %v2329_v0 = vpop.eup %2328 }
0x152f   :  { %953 = vrot.lane.b32.xlu0 %v2329_v0, %s2381_s4  ;;  %v1281_v0 = vsub.s32 1, %v2586_v4 }
0x15a1   :  { %v954_v16 = vpop.permute.xlu0 %953 }
0x15a2   :  { %v956_v18 = vmul.f32 %v2327_v56, %v954_v16 }
0x15a4   :  { %v972_v21 = vrot.slane %v956_v18, 7  ;;  %v970_v22 = vsel %vm969_vm10, %v968_v45, %v956_v18 }
0x15a5   :  { %996 = vrot.lane.b32.xlu1 %v970_v22, %s2382_s5 }
0x15a6   :  { %v988_v25 = vsel %vm957_vm2, %v972_v21, %v974_v19 }
0x15a7   :  { %v989_v26 = vsel %vm959_vm3, %v988_v25, %v976_v23  ;;  %v1376_v23 = vsub.s32 2, %v2586_v4  ;;  %vm1853_vm3 = vcmask 64519  }
0x15a8   :  { %v990_v28 = vsel %vm961_vm4, %v989_v26, %v978_v24 }
0x15a9   :  { %v991_v30 = vsel %vm963_vm5, %v990_v28, %v980_v3 }
0x15aa   :  { %v992_v31 = vsel %vm965_vm6, %v991_v30, %v982_v27 }
0x15ab   :  { %v993_v59 = vsel %vm967_vm7, %v992_v31, %v984_v29 }
0x15ac   :  { %v994_v32 = vsel %vm969_vm10, %v993_v59, %v986_v20 }
0x15ad   :  { %1000 = vrot.lane.b32.xlu0 %v994_v32, %s2382_s5 }
0x1617   :  { %v997_v12 = vpop.permute.xlu1 %996 }
0x161f   :  { %v1001_v35 = vpop.permute.xlu0 %1000 }
0x1620   :  { %v1004_v36 = vsel %vm1003_vm11, %v997_v12, %v1001_v35 }
0x1621   :  { %2154 = vmatmul.mubr.msk.f32.vlgmr.msra.gmra.mrb[8].mxu1 %vm37_vm1, %v1004_v36 }
0x1622   :  { %2162 = vmatpush3.msra.mxu1 %v2383_v1  ;;  %2163 = vmatprep.mubr.msk.f32.mxu1 %vm2379_vm0, %v2380_v11 }
0x1623   :  { %2171 = vmatprep.subr.mxu1 %v2380_v11 }
0x16f4   :  { %v1078_v45 = vpop.f32.mrb[8].mxu1 }
0x16f5   :  { %v2655_v47 = vadd.f32 %v1969_v44, %v1078_v45  ;;  %v2155_v48 = vpop.f32.mrb[9].mxu1 }
0x16f7   :  { %v1183_v50 = vadd.f32 %v2653_v46, %v2655_v47 }
0x16f9   :  { %v1187_v51 = vrot.slane %v1183_v50, %v1186_v49  ;;  %v1566_v50 = vsub.s32 4, %v2586_v4 }
0x16fb   :  { %v1188_v52 = vsel %vm2593_vm9, %v1187_v51, 0.0 }
0x16fc   :  { %2164 = vmatmul.mubr.msk.f32.vlgmr.msra.gmra.mrb[10].mxu1 %vm1093_vm8, %v1188_v52 }
0x16fd   :  { %2172 = vmatpush3.msra.mxu1 %v2383_v1  ;;  %2173 = vmatprep.mubr.msk.f32.mxu1 %vm2379_vm0, %v2380_v11 }
0x16fe   :  { %2181 = vmatprep.subr.mxu1 %v2380_v11 }
0x17cf   :  { %v1258_v54 = vpop.f32.mrb[10].mxu1 }
0x17d0   :  { %v2668_v55 = vadd.f32 %v1258_v54, %v2643_v34  ;;  %v2165_v56 = vpop.f32.mrb[11].mxu1 }
0x17d2   :  { %v1262_v57 = vsel %vm1093_vm8, %v2668_v55, -inf }
0x17d3   :  { %v1263_v58 = vrot.slane %v1262_v57, 4 }
0x17d5   :  { %v1264_v60 = vmax.f32 %v1262_v57, %v1263_v58 }
0x17d7   :  { %v1265_v61 = vrot.slane %v1264_v60, 2 }
0x17d9   :  { %v1266_v62 = vmax.f32 %v1264_v60, %v1265_v61 }
0x17db   :  { %v1267_v63 = vrot.slane %v1266_v62, 1 }
0x17dd   :  { %v2672_v17 = vmax.f32 %v1266_v62, %v1267_v63 }
0x17df   :  { %vm1269_vm12 = vcmp.eq.f32.partialorder %v2668_v55, %v2672_v17  ;;  %v1278_v2 = vadd.f32 %v2672_v17, %v2655_v47 }
0x17e1   :  { %v1282_v6 = vrot.slane %v1278_v2, %v1281_v0 }
0x17e3   :  { %v1283_v7 = vsel %vm2593_vm9, %v1282_v6, 0.0 }
0x17e4   :  { %2169 = vmatmul.mubr.msk.f32.vlgmr.msra.gmra.mrb[12].mxu0 %vm1093_vm8, %v1283_v7 }
0x17e5   :  { %2177 = vmatpush3.msra.mxu0 %v2383_v1  ;;  %2178 = vmatprep.mubr.msk.f32.mxu0 %vm2379_vm0, %v2380_v11 }
0x17e6   :  { %2186 = vmatprep.subr.mxu0 %v2380_v11 }
0x18b7   :  { %v1353_v9 = vpop.f32.mrb[12].mxu0 }
0x18b8   :  { %v2687_v10 = vadd.f32 %v1353_v9, %v2643_v34  ;;  %v2170_v13 = vpop.f32.mrb[13].mxu0 }
0x18ba   :  { %v1357_v14 = vsel %vm1093_vm8, %v2687_v10, -inf }
0x18bb   :  { %v1358_v15 = vrot.slane %v1357_v14, 4 }
0x18bd   :  { %v1359_v16 = vmax.f32 %v1357_v14, %v1358_v15 }
0x18bf   :  { %v1360_v18 = vrot.slane %v1359_v16, 2 }
0x18c1   :  { %v1361_v19 = vmax.f32 %v1359_v16, %v1360_v18 }
0x18c3   :  { %v1362_v21 = vrot.slane %v1361_v19, 1 }
0x18c5   :  { %v2691_v22 = vmax.f32 %v1361_v19, %v1362_v21 }
0x18c7   :  { %vm1364_vm13 = vcmp.eq.f32.partialorder %v2687_v10, %v2691_v22  ;;  %v1373_v24 = vadd.f32 %v2691_v22, %v2655_v47 }
0x18c9   :  { %v1377_v25 = vrot.slane %v1373_v24, %v1376_v23 }
0x18cb   :  { %v1378_v3 = vsel %vm2593_vm9, %v1377_v25, 0.0 }
0x18cc   :  { %2174 = vmatmul.mubr.msk.f32.vlgmr.msra.gmra.mrb[12].mxu1 %vm1093_vm8, %v1378_v3  ;;  %v1756_v3 = vsub.s32 6, %v2586_v4 }
0x18cd   :  { %2182 = vmatpush3.msra.mxu1 %v2383_v1  ;;  %2183 = vmatprep.mubr.msk.f32.mxu1 %vm2379_vm0, %v2380_v11 }
0x18ce   :  { %2191 = vmatprep.subr.mxu1 %v2380_v11 }
0x199f   :  { %v1448_v26 = vpop.f32.mrb[12].mxu1 }
0x19a0   :  { %v2706_v27 = vadd.f32 %v1448_v26, %v2643_v34  ;;  %v2175_v28 = vpop.f32.mrb[13].mxu1 }
0x19a2   :  { %v1452_v29 = vsel %vm1093_vm8, %v2706_v27, -inf }
0x19a3   :  { %v1453_v30 = vrot.slane %v1452_v29, 4 }
0x19a5   :  { %v1454_v20 = vmax.f32 %v1452_v29, %v1453_v30 }
0x19a7   :  { %v1455_v31 = vrot.slane %v1454_v20, 2 }
0x19a9   :  { %v1456_v59 = vmax.f32 %v1454_v20, %v1455_v31 }
0x19ab   :  { %v1457_v32 = vrot.slane %v1456_v59, 1 }
0x19ad   :  { %v2710_v37 = vmax.f32 %v1456_v59, %v1457_v32 }
0x19af   :  { %vm1459_vm14 = vcmp.eq.f32.partialorder %v2706_v27, %v2710_v37  ;;  %v1468_v12 = vadd.f32 %v2710_v37, %v2655_v47 }
0x19b1   :  { %v1472_v35 = vrot.slane %v1468_v12, %v1471_v33 }
0x19b3   :  { %v1473_v36 = vsel %vm2593_vm9, %v1472_v35, 0.0 }
0x19b4   :  { %2179 = vmatmul.mubr.msk.f32.vlgmr.msra.gmra.mrb[14].mxu0 %vm1093_vm8, %v1473_v36  ;;  %v30_v36 = vld [vmem:[%s2891_s1 + $0x71] sm:$0x1]  ;;  %s2384_s1 = smov [#allocation2]  }
0x19b5   :  { %2187 = vmatpush3.msra.mxu0 %v2383_v1  ;;  %2188 = vmatprep.mubr.msk.f32.mxu0 %vm2379_vm0, %v2380_v11  ;;  %v1850_v8 = vrot.slane %v30_v36, 1  ;;  %s1930_s22 = sshll.u32 %s2384_s1, 4  ;;  %s1931_s22 = int_to_ptr.vmem [resolvable:$true] %s1930_s22 }
0x19b6   :  { %s2330_s23 = scalar_lea.vmem %s1931_s22, 16  ;;  %s2334_s24 = scalar_lea.vmem %s1931_s22, 32 }
0x19b7   :  { %p2331_p0 = scmp.ne.s32.totalorder %s1931_s22, %s2330_s23  ;;  %p2335_p1 = scmp.lt.s32.totalorder %s1931_s22, %s1931_s22 }
0x19b8   :  { %p2336_p2 = scmp.lt.s32.totalorder %s2334_s24, %s2330_s23 }
0x19ba   :  { %p2337_p3 = por %p2336_p2, %p2335_p1 }
0x19bc   :  { %p2338_p4 = pnand %p2337_p3, %p2331_p0 }
0x1a87   :  { %v1543_v38 = vpop.f32.mrb[14].mxu0 }
0x1a88   :  { %v2724_v39 = vadd.f32 %v1543_v38, %v2643_v34  ;;  %v2180_v40 = vpop.f32.mrb[15].mxu0 }
0x1a8a   :  { %v1547_v41 = vsel %vm1093_vm8, %v2724_v39, -inf }
0x1a8b   :  { %v1548_v42 = vrot.slane %v1547_v41, 4 }
0x1a8d   :  { %v1549_v43 = vmax.f32 %v1547_v41, %v1548_v42 }
0x1a8f   :  { %v1550_v44 = vrot.slane %v1549_v43, 2 }
0x1a91   :  { %v1551_v45 = vmax.f32 %v1549_v43, %v1550_v44  ;;  %v2771_v43 = vcvt.s32.f32 %v2588_v5 }
0x1a93   :  { %v1552_v48 = vrot.slane %v1551_v45, 1 }
0x1a95   :  { %v2728_v49 = vmax.f32 %v1551_v45, %v1552_v48 }
0x1a97   :  { %vm1554_vm15 = vcmp.eq.f32.partialorder %v2724_v39, %v2728_v49  ;;  %v1563_v51 = vadd.f32 %v2728_v49, %v2655_v47 }
0x1a99   :  { %v1567_v52 = vrot.slane %v1563_v51, %v1566_v50  ;;  %v2779_v50 = vcvt.s32.f32 %v2586_v4 }
0x1a9b   :  { %v1568_v54 = vsel %vm2593_vm9, %v1567_v52, 0.0  ;;  %v1460_v39 = vsel %vm1459_vm14, %v2779_v50, 1e+09  ;;  %v1365_v27 = vsel %vm1364_vm13, %v2779_v50, 1e+09  ;;  %vm1174_vm14 = vcmp.eq.f32.partialorder %v2646_v53, %v2653_v46 }
0x1a9c   :  { %2184 = vmatmul.mubr.msk.f32.vlgmr.msra.gmra.mrb[14].mxu1 %vm1093_vm8, %v1568_v54  ;;  %v1461_v49 = vsel %vm1093_vm8, %v1460_v39, inf  ;;  %v1366_v37 = vsel %vm1093_vm8, %v1365_v27, inf  ;;  %v1270_v10 = vsel %vm1269_vm12, %v2779_v50, 1e+09  ;;  %v1175_v55 = vsel %vm1174_vm14, %v2779_v50, 1e+09 }
0x1a9d   :  { %2192 = vmatpush3.msra.mxu1 %v2383_v1  ;;  %2193 = vmatprep.mubr.msk.f32.mxu1 %vm2379_vm0, %v2380_v11  ;;  %v1661_v1 = vsub.s32 5, %v2586_v4  ;;  %v1271_v22 = vsel %vm1093_vm8, %v1270_v10, inf  ;;  %v1176_v17 = vsel %vm1093_vm8, %v1175_v55, inf  ;;  %vm1863_vm12 = vcmp.eq.s32.totalorder %v2588_v5, 7 }
0x1b6f   :  { %v1638_v56 = vpop.f32.mrb[14].mxu1 }
0x1b70   :  { %v2742_v57 = vadd.f32 %v1638_v56, %v2643_v34  ;;  %v2185_v58 = vpop.f32.mrb[15].mxu1 }
0x1b72   :  { %v1642_v60 = vsel %vm1093_vm8, %v2742_v57, -inf }
0x1b73   :  { %v1643_v61 = vrot.slane %v1642_v60, 4 }
0x1b75   :  { %v1644_v62 = vmax.f32 %v1642_v60, %v1643_v61 }
0x1b77   :  { %v1645_v63 = vrot.slane %v1644_v62, 2 }
0x1b79   :  { %v1646_v0 = vmax.f32 %v1644_v62, %v1645_v63 }
0x1b7b   :  { %v1647_v2 = vrot.slane %v1646_v0, 1 }
0x1b7d   :  { %v2746_v6 = vmax.f32 %v1646_v0, %v1647_v2 }
0x1b7f   :  { %vm1649_vm0 = vcmp.eq.f32.partialorder %v2742_v57, %v2746_v6  ;;  %v1658_v11 = vadd.f32 %v2746_v6, %v2655_v47  ;;  %v1555_v57 = vsel %vm1554_vm15, %v2779_v50, 1e+09  ;;  %vm1870_vm15 = vcmp.eq.s32.totalorder %v2588_v5, 6 }
0x1b80   :  { %v1556_v6 = vsel %vm1093_vm8, %v1555_v57, inf }
0x1b81   :  { %v1662_v7 = vrot.slane %v1658_v11, %v1661_v1 }
0x1b83   :  { %v1663_v9 = vsel %vm2593_vm9, %v1662_v7, 0.0 }
0x1b84   :  { %2189 = vmatmul.mubr.msk.f32.vlgmr.msra.gmra.mrb[16].mxu0 %vm1093_vm8, %v1663_v9 }
0x1c57   :  { %v1733_v13 = vpop.f32.mrb[16].mxu0 }
0x1c58   :  { %v1734_v14 = vadd.f32 %v1733_v13, %v2643_v34  ;;  %v2190_v15 = vpop.f32.mrb[17].mxu0 }
0x1c5a   :  { %v1737_v16 = vsel %vm1093_vm8, %v1734_v14, -inf }
0x1c5b   :  { %v1738_v18 = vrot.slane %v1737_v16, 4 }
0x1c5d   :  { %v1739_v19 = vmax.f32 %v1737_v16, %v1738_v18 }
0x1c5f   :  { %v1740_v21 = vrot.slane %v1739_v19, 2 }
0x1c61   :  { %v1741_v23 = vmax.f32 %v1739_v19, %v1740_v21 }
0x1c63   :  { %v1742_v24 = vrot.slane %v1741_v23, 1 }
0x1c65   :  { %v1743_v25 = vmax.f32 %v1741_v23, %v1742_v24 }
0x1c67   :  { %vm1744_vm1 = vcmp.eq.f32.partialorder %v1734_v14, %v1743_v25  ;;  %v1753_v26 = vadd.f32 %v1743_v25, %v2655_v47  ;;  %v1650_v14 = vsel %vm1649_vm0, %v2779_v50, 1e+09  ;;  %vm1877_vm0 = vcmp.eq.s32.totalorder %v2588_v5, 5 }
0x1c68   :  { %v1745_v4 = vsel %vm1744_vm1, %v2779_v50, 1e+09  ;;  %v1651_v21 = vsel %vm1093_vm8, %v1650_v14, inf  ;;  %vm1884_vm1 = vcmp.eq.s32.totalorder %v2588_v5, 4 }
0x1c69   :  { %v1757_v28 = vrot.slane %v1753_v26, %v1756_v3  ;;  %v1746_v2 = vsel %vm1093_vm8, %v1745_v4, inf  ;;  %v1652_v23 = vrot.slane %v1651_v21, 4 }
0x1c6a   :  { %v1747_v1 = vrot.slane %v1746_v2, 4 }
0x1c6b   :  { %v1758_v29 = vsel %vm2593_vm9, %v1757_v28, 0.0  ;;  %v1653_v24 = vmin.f32 %v1651_v21, %v1652_v23  ;;  %v1177_v21 = vrot.slane %v1176_v17, 4 }
0x1c6c   :  { %2194 = vmatmul.mubr.msk.f32.vlgmr.msra.gmra.mrb[16].mxu1 %vm1093_vm8, %v1758_v29  ;;  %v1748_v11 = vmin.f32 %v1746_v2, %v1747_v1  ;;  %v1272_v1 = vrot.slane %v1271_v22, 4 }
0x1c6d   :  { %v1654_v25 = vrot.slane %v1653_v24, 2  ;;  %v1178_v23 = vmin.f32 %v1176_v17, %v1177_v21 }
0x1c6e   :  { %v1749_v7 = vrot.slane %v1748_v11, 2 }
0x1c6f   :  { %v1655_v3 = vmin.f32 %v1653_v24, %v1654_v25  ;;  %v1179_v24 = vrot.slane %v1178_v23, 2 }
0x1c70   :  { %v1750_v9 = vmin.f32 %v1748_v11, %v1749_v7  ;;  %v1273_v11 = vmin.f32 %v1271_v22, %v1272_v1 }
0x1c71   :  { %v1656_v26 = vrot.slane %v1655_v3, 1  ;;  %v1180_v25 = vmin.f32 %v1178_v23, %v1179_v24 }
0x1c72   :  { %v1751_v13 = vrot.slane %v1750_v9, 1  ;;  %v1274_v7 = vrot.slane %v1273_v11, 2 }
0x1c73   :  { %v1657_v29 = vmin.f32 %v1655_v3, %v1656_v26 }
0x1c74   :  { %v1752_v16 = vmin.f32 %v1750_v9, %v1751_v13  ;;  %v1275_v9 = vmin.f32 %v1273_v11, %v1274_v7 }
0x1c76   :  { %v1276_v13 = vrot.slane %v1275_v9, 1 }
0x1d3f   :  { %v1828_v30 = vpop.f32.mrb[16].mxu1 }
0x1d40   :  { %v1829_v20 = vadd.f32 %v1828_v30, %v2643_v34  ;;  %v2195_v31 = vpop.f32.mrb[17].mxu1 }
0x1d41   :  { %v1557_v31 = vrot.slane %v1556_v6, 4 }
0x1d42   :  { %v1832_v59 = vsel %vm1093_vm8, %v1829_v20, -inf }
0x1d43   :  { %v1833_v32 = vrot.slane %v1832_v59, 4 }
0x1d45   :  { %v1834_v33 = vmax.f32 %v1832_v59, %v1833_v32  ;;  %v1558_v59 = vmin.f32 %v1556_v6, %v1557_v31 }
0x1d47   :  { %v1835_v12 = vrot.slane %v1834_v33, 2  ;;  %v1559_v32 = vrot.slane %v1558_v59, 2 }
0x1d49   :  { %v1836_v35 = vmax.f32 %v1834_v33, %v1835_v12  ;;  %v1560_v33 = vmin.f32 %v1558_v59, %v1559_v32 }
0x1d4b   :  { %v1837_v38 = vrot.slane %v1836_v35, 1  ;;  %v1561_v12 = vrot.slane %v1560_v33, 1 }
0x1d4d   :  { %v1838_v40 = vmax.f32 %v1836_v35, %v1837_v38  ;;  %v1562_v36 = vmin.f32 %v1560_v33, %v1561_v12 }
0x1d4f   :  { %vm1839_vm2 = vcmp.eq.f32.partialorder %v1829_v20, %v1838_v40  ;;  %v1848_v41 = vadd.f32 %v1838_v40, %v2655_v47 }
0x1d50   :  { %v1840_v47 = vsel %vm1839_vm2, %v2779_v50, 1e+09  ;;  %vm1891_vm2 = vcmp.eq.s32.totalorder %v2588_v5, 3  ;;  %v1181_v50 = vrot.slane %v1180_v25, 1 }
0x1d51   :  { %v1852_v42 = vadd.f32 %v1850_v8, %v1848_v41  ;;  %v1841_v51 = vsel %vm1093_vm8, %v1840_v47, inf  ;;  %v1462_v8 = vrot.slane %v1461_v49, 4  ;;  %vm1898_vm8 = vcmp.eq.s32.totalorder %v2588_v5, 2 }
0x1d52   :  { %v1842_v52 = vrot.slane %v1841_v51, 4 }
0x1d53   :  { %v1854_v34 = vsel %vm1853_vm3, %v1852_v42, -inf  ;;  %v1463_v41 = vmin.f32 %v1461_v49, %v1462_v8 }
0x1d54   :  { %1855 = vmax.xlane.f32.xlu1 %v1854_v34  ;;  %v1843_v54 = vmin.f32 %v1841_v51, %v1842_v52 }
0x1d56   :  { %v1844_v56 = vrot.slane %v1843_v54, 2 }
0x1d58   :  { %v1845_v58 = vmin.f32 %v1843_v54, %v1844_v56  ;;  %v1367_v54 = vrot.slane %v1366_v37, 4 }
0x1d5a   :  { %v1846_v60 = vrot.slane %v1845_v58, 1  ;;  %v1368_v56 = vmin.f32 %v1366_v37, %v1367_v54 }
0x1d5c   :  { %v1847_v62 = vmin.f32 %v1845_v58, %v1846_v60  ;;  %v1369_v58 = vrot.slane %v1368_v56, 2 }
0x1d5e   :  { %v1370_v60 = vmin.f32 %v1368_v56, %v1369_v58 }
0x1de1   :  { %v2773_v44 = vpop.xlane.xlu1 %1855 }
0x1de2   :  { %vm1858_vm4 = vcmp.eq.f32.partialorder %v1852_v42, %v2773_v44  ;;  %v1464_v42 = vrot.slane %v1463_v41, 2 }
0x1de3   :  { %v1859_v45 = vsel %vm1858_vm4, %v2771_v43, 1e+09  ;;  %vm1905_vm4 = vcmp.eq.s32.totalorder %v2588_v5, 1 }
0x1de4   :  { %v1860_v48 = vsel %vm1853_vm3, %v1859_v45, inf  ;;  %v1465_v34 = vmin.f32 %v1463_v41, %v1464_v42 }
0x1de5   :  { %1861 = vmin.xlane.f32.xlu0 %v1860_v48 }
0x1de6   :  { %v1466_v45 = vrot.slane %v1465_v34, 1 }
0x1de8   :  { %v1467_v47 = vmin.f32 %v1465_v34, %v1466_v45 }
0x1e72   :  { %v2783_v61 = vpop.xlane.xlu0 %1861 }
0x1e73   :  { %vm1865_vm5 = vcmp.eq.f32.partialorder %v2771_v43, %v2783_v61  ;;  %v1864_v3 = vsel %vm1863_vm12, %v2783_v61, 0.0 }
0x1e74   :  { %v1866_v63 = vsel %vm1865_vm5, %v1847_v62, 0.0  ;;  %v1371_v62 = vrot.slane %v1370_v60, 1  ;;  %vm1912_vm5 = vcmp.eq.s32.totalorder %v2588_v5, 0 }
0x1e75   :  { %v1867_v0 = vsel %vm1853_vm3, %v1866_v63, 0.0 }
0x1e76   :  { %1868 = vadd.xlane.f32.xlu0 %v1867_v0  ;;  %v1372_v0 = vmin.f32 %v1370_v60, %v1371_v62 }
0x1f03   :  { %v2791_v15 = vpop.xlane.xlu0 %1868 }
0x1f04   :  { %vm1872_vm6 = vcmp.eq.f32.partialorder %v2771_v43, %v2791_v15  ;;  %v1871_v53 = vsel %vm1870_vm15, %v2791_v15, %v1864_v3 }
0x1f05   :  { %v1873_v18 = vsel %vm1872_vm6, %v1752_v16, 0.0 }
0x1f06   :  { %v1874_v19 = vsel %vm1853_vm3, %v1873_v18, 0.0  ;;  %v1277_v18 = vmin.f32 %v1275_v9, %v1276_v13 }
0x1f07   :  { %1875 = vadd.xlane.f32.xlu1 %v1874_v19 }
0x1f94   :  { %v2801_v28 = vpop.xlane.xlu1 %1875 }
0x1f95   :  { %vm1879_vm7 = vcmp.eq.f32.partialorder %v2771_v43, %v2801_v28  ;;  %v1878_v46 = vsel %vm1877_vm0, %v2801_v28, %v1871_v53 }
0x1f96   :  { %v1880_v30 = vsel %vm1879_vm7, %v1657_v29, 0.0 }
0x1f97   :  { %v1881_v20 = vsel %vm1853_vm3, %v1880_v30, 0.0 }
0x1f98   :  { %1882 = vadd.xlane.f32.xlu0 %v1881_v20  ;;  %v1182_v20 = vmin.f32 %v1180_v25, %v1181_v50 }
0x2025   :  { %v2811_v35 = vpop.xlane.xlu0 %1882 }
0x2026   :  { %vm1886_vm9 = vcmp.eq.f32.partialorder %v2771_v43, %v2811_v35  ;;  %v1885_v26 = vsel %vm1884_vm1, %v2811_v35, %v1878_v46 }
0x2027   :  { %v1887_v38 = vsel %vm1886_vm9, %v1562_v36, 0.0 }
0x2028   :  { %v1888_v40 = vsel %vm1853_vm3, %v1887_v38, 0.0 }
0x2029   :  { %1889 = vadd.xlane.f32.xlu1 %v1888_v40 }
0x20b6   :  { %v1890_v48 = vpop.xlane.xlu1 %1889 }
0x20b7   :  { %vm1893_vm10 = vcmp.eq.f32.partialorder %v2771_v43, %v1890_v48  ;;  %v1892_v29 = vsel %vm1891_vm2, %v1890_v48, %v1885_v26 }
0x20b8   :  { %v1894_v51 = vsel %vm1893_vm10, %v1467_v47, 0.0 }
0x20b9   :  { %v1895_v52 = vsel %vm1853_vm3, %v1894_v51, 0.0 }
0x20ba   :  { %1896 = vadd.xlane.f32.xlu0 %v1895_v52 }
0x2147   :  { %v1897_v63 = vpop.xlane.xlu0 %1896 }
0x2148   :  { %vm1900_vm11 = vcmp.eq.f32.partialorder %v2771_v43, %v1897_v63  ;;  %v1899_v30 = vsel %vm1898_vm8, %v1897_v63, %v1892_v29 }
0x2149   :  { %v1901_v4 = vsel %vm1900_vm11, %v1372_v0, 0.0 }
0x214a   :  { %v1902_v2 = vsel %vm1853_vm3, %v1901_v4, 0.0 }
0x214b   :  { %1903 = vadd.xlane.f32.xlu1 %v1902_v2 }
0x21d8   :  { %v1904_v16 = vpop.xlane.xlu1 %1903 }
0x21d9   :  { %vm1907_vm13 = vcmp.eq.f32.partialorder %v2771_v43, %v1904_v16  ;;  %v1906_v15 = vsel %vm1905_vm4, %v1904_v16, %v1899_v30 }
0x21da   :  { %v1908_v19 = vsel %vm1907_vm13, %v1277_v18, 0.0 }
0x21db   :  { %v1909_v14 = vsel %vm1853_vm3, %v1908_v19, 0.0 }
0x21dc   :  { %1910 = vadd.xlane.f32.xlu0 %v1909_v14 }
0x2269   :  { %v1911_v61 = vpop.xlane.xlu0 %1910 }
0x226a   :  { %vm1914_vm6 = vcmp.eq.f32.partialorder %v2771_v43, %v1911_v61  ;;  %v1913_v28 = vsel %vm1912_vm5, %v1911_v61, %v1906_v15 }
0x226b   :  { %v1915_v57 = vsel %vm1914_vm6, %v1182_v20, 0.0  ;;  %v2256_v6 = vtrunc.f32 %v1913_v28 }
0x226c   :  { %v1916_v31 = vsel %vm1853_vm3, %v1915_v57, 0.0 }
0x226d   :  { %1917 = vadd.xlane.f32.xlu1 %v1916_v31  ;;  %v2257_v59 = vcvt.f32.s32 %v2256_v6 }
0x226f   :  { %1920 = vst.msk [vmem:[#allocation2 - $0x7] sm:$0x80] %vm1853_vm3, %v2257_v59 }
0x2270   :  { %2341 = shalt.err (!%p2338_p4)
}
0x2271   :  { %s2342_s27 = scalar_lea.hbm %s2892_s2, 16 }
0x2272   :  { %p2343_p5 = scmp.ne.s32.totalorder %s2892_s2, %s2342_s27  ;;  %p2346_p6 = scmp.lt.u32.totalorder %s2342_s27, %s2892_s2 }
0x2274   :  { %p2348_p7 = pnand %p2346_p6, %p2343_p5 }
0x2276   :  { %2351 = shalt.err (!%p2348_p7)
}
0x2277   :  { %1933 = dma.vmem_to_hbm [thread:$0]  %s1931_s22, 16, %s2892_s2, [#allocation3]  }
0x2278   :  { %s2385_s6 = smov [#allocation4]  }
0x2279   :  { %s1940_s7 = sshll.u32 %s2385_s6, 4  ;;  %s1941_s7 = int_to_ptr.vmem [resolvable:$true] %s1940_s7 }
0x227a   :  { %s2352_s8 = scalar_lea.vmem %s1941_s7, 16  ;;  %s2356_s9 = scalar_lea.vmem %s1941_s7, 32 }
0x227b   :  { %p2353_p8 = scmp.ne.s32.totalorder %s1941_s7, %s2352_s8  ;;  %p2357_p9 = scmp.lt.s32.totalorder %s1941_s7, %s1941_s7 }
0x227c   :  { %p2358_p10 = scmp.lt.s32.totalorder %s2356_s9, %s2352_s8 }
0x227e   :  { %p2359_p11 = por %p2358_p10, %p2357_p9 }
0x2280   :  { %p2360_p12 = pnand %p2359_p11, %p2353_p8 }
0x22fa   :  { %v1918_v43 = vpop.xlane.xlu1 %1917 }
0x22fb   :  { %v1921_v32 = vsel %vm1905_vm4, %v1918_v43, 0.0 }
0x22fc   :  { %v1922_v33 = vsel %vm1912_vm5, %v2773_v44, %v1921_v32 }
0x22fd   :  { %1923 = vst.msk [vmem:[#allocation4 - $0x7] sm:$0x80] %vm1853_vm3, %v1922_v33 }
0x22fe   :  { %2363 = shalt.err (!%p2360_p12)
}
0x22ff   :  { %s2364_s11 = scalar_lea.hbm %s2893_s3, 16 }
0x2300   :  { %p2365_p13 = scmp.ne.s32.totalorder %s2893_s3, %s2364_s11  ;;  %p2368_p0 = scmp.lt.u32.totalorder %s2364_s11, %s2893_s3 }
0x2302   :  { %p2370_p1 = pnand %p2368_p0, %p2365_p13 }
0x2304   :  { %2373 = shalt.err (!%p2370_p1)
}
0x2305   :  { %1943 = dma.vmem_to_hbm [thread:$0]  %s1941_s7, 16, %s2893_s3, [#allocation5]  }
0x2306   :  { %2374 = dma.done.wait [#allocation3], 16  }
0x2307   :  { %2375 = vsyncadd [#allocation3], 4294967280 }
0x2308   :  { %2376 = dma.done.wait [#allocation5], 16  }
0x2309   :  { %2377 = vsyncadd [#allocation5], 4294967280 }
0x230a   :  { %1950 = vsyncpa [#allocation3], 1 }
0x230b   :  { %1951 = vsyncpa [#allocation5], 1 }

</bundles_post_ra>
